<compile_context>
chip_gen: v5e
topology: v5e:2x2
jax: 0.10.0
libtpu: 0.0.40
codegen_flags: <defaults>
</compile_context>

<pallas_src>
import functools

import jax
import jax.numpy as jnp
from jax.experimental import pallas as pl
from jax.experimental.pallas import tpu as pltpu


# ------------------------------- kernel --------------------------------------

def _convblock_kernel(a_ref, w1_ref, b1_ref, w2_ref, bf_ref, out_ref, *,
                      T, tT, K, dil, pad, cout, fuse_conv2, bf16_elem):
    """One (batch b, time-tile t) program.

    a_ref  : (1, Tp, Cs)   bf16  pre-stacked operand: K gelu(x) taps + raw x
    w1_ref : (Cs, 2*Cp)    bf16  [conv1 taps | 1x1 projector] fused weights
    b1_ref : (1, Cp)       f32   conv1 bias
    w2_ref : (K*Cp, Cp) or (K, Cp, Cp)  bf16  conv2 taps
    bf_ref : (1, Cp)       f32   b2 + bp (final bias; projector bias folded in)
    out_ref: (1, Cout, tT) f32   channels-first tile (lane-dense over time)
    """
    t = pl.program_id(1)
    cp = b1_ref.shape[-1]
    tTe = tT + 2 * pad                          # tile rows + conv2 halo rows

    start = t * tT
    if tT % 128 == 0:
        start = pl.multiple_of(start, 128)
    elif tT % 8 == 0:
        start = pl.multiple_of(start, 8)
    a = a_ref[0, pl.ds(start, tTe), :]          # (tTe, Cs) bf16

    # One MXU contraction (depth Cs=(K+1)*Cin): conv1 pre-activation in lanes
    # [:Cp], 1x1-projector residual in lanes [Cp:].
    z = jnp.dot(a, w1_ref[...], preferred_element_type=jnp.float32)   # (tTe, 2Cp)
    acc1 = z[:, :cp] + b1_ref[...]
    residual = z[pad:pad + tT, cp:]             # rows aligned with the tile core

    # gelu(conv1); rows whose global time index is outside [0, T) are forced to
    # zero, reproducing SamePadConv's zero padding for conv2 exactly (the
    # cross-tile halo is recomputed, never communicated).
    row = jax.lax.broadcasted_iota(jnp.int32, (tTe, 1), 0)
    valid = (start + row >= pad) & (start + row < T + pad)
    hsrc = acc1.astype(jnp.bfloat16) if bf16_elem else acc1
    h = jax.nn.gelu(hsrc, approximate=True)     # tanh approx (EUP path)
    h = jnp.where(valid, h, jnp.zeros_like(h)).astype(jnp.bfloat16)   # (tTe, Cp)

    if fuse_conv2:
        # v6e/v7x: one depth-K*Cp contraction built from lane-aligned windows.
        h_stack = jnp.concatenate(
            [h[k * dil:k * dil + tT, :] for k in range(K)], axis=-1)  # (tT, K*Cp)
        acc2 = jnp.dot(h_stack, w2_ref[...], preferred_element_type=jnp.float32)
    else:
        # v5e: MXU depth already saturated at 128; per-tap accumulating dots
        # avoid materializing the (tT, K*Cp) concat temporary.
        acc2 = jnp.dot(h[:tT, :], w2_ref[0], preferred_element_type=jnp.float32)
        for k in range(1, K):
            acc2 = acc2 + jnp.dot(h[k * dil:k * dil + tT, :], w2_ref[k],
                                  preferred_element_type=jnp.float32)

    y = acc2 + bf_ref[...] + residual                                 # (tT, Cp) f32

    # Transpose on the XLU so the output is stored directly in the PyTorch
    # (B, C, T) layout with lane-dense time-major stores (no wrapper-side
    # trim/transpose HBM passes over the output).
    out_ref[0] = jnp.transpose(y)[:cout, :].astype(out_ref.dtype)


# ------------------------------ wrapper ---------------------------------------

def _round_up(x, m):
    return -(-x // m) * m


def _pick_time_tile(T, max_tile, Cp):
    """Time-tile length: a multiple of 128 (lane-dense channels-first stores),
    or a single tile covering the whole (8-rounded) sequence."""
    budget = 24 * 2 ** 20                       # per-tile f32-temporaries budget
    per_row = max(Cp, 128) * 48                 # ~bytes of live temporaries / row
    cap = min(max_tile, max(128, budget // per_row))
    cap = max(128, (cap // 128) * 128)
    if T <= cap:
        return _round_up(T, 8)                  # one tile covers the sequence
    for cand in range(cap, 127, -128):          # largest 128-multiple dividing T
        if T % cand == 0:
            return cand
    return cap                                  # ragged: pad T up, trim after


def _default_arch_flags():
    """(fuse_conv2, bf16_elementwise) defaults per TPU generation.

    v5e/v5p (and older): 128-deep MXU -> per-tap conv2 dots; no bf16 VPU/EUP ->
    f32 elementwise.  v6e / v7x (and unknown): fused depth-K*Cp conv2 dot and
    bf16 elementwise math.
    """
    try:
        kind = jax.devices()[0].device_kind.lower()
    except Exception:
        kind = ""
    old = any(v in kind for v in ("v2", "v3", "v4", "v5"))
    return (not old, not old)


@functools.partial(
    jax.jit, static_argnames=("kernel_size", "dilation", "max_time_tile",
                              "fuse_conv2", "bf16_elementwise"))
def _conv_block_forward(x_bct, params, *, kernel_size, dilation, max_time_tile,
                        fuse_conv2, bf16_elementwise):
    B, Cin, T = x_bct.shape
    w1, b1, w2, b2, wp, bp = params             # w*: (K, Cin/out, Cout), b*: (Cout,)
    Cout = w1.shape[-1]
    K = kernel_size
    rf = (K - 1) * dilation + 1                 # receptive field
    pad = rf // 2                               # SamePadConv padding
    Cp = _round_up(Cout, 128)                   # lane-dense channel width
    tT = _pick_time_tile(T, max_time_tile, Cp)
    nT = -(-T // tT)
    T_out = nT * tT                             # padded sequence length (>= T)
    Tp = T_out + 4 * pad                        # + conv1-of-halo rows each side
    Cs = (K + 1) * Cin                          # stacked contraction depth

    # ---- wrapper-side prep (all tiny: (B, Tp, <=Cs) + weight-sized arrays) ----
    x_btc = jnp.transpose(x_bct, (0, 2, 1)).astype(jnp.float32)       # (B, T, Cin)
    x_pad = jnp.pad(x_btc, ((0, 0), (2 * pad, 2 * pad + (T_out - T)), (0, 0)))
    # First gelu hoisted out of the kernel (exact erf, matches F.gelu); gelu(0)=0
    # keeps the zero padding exact.
    g_pad = jax.nn.gelu(x_pad, approximate=False)
    # Pre-stack conv1's K dilated taps + the raw-x projector operand so the
    # kernel does ONE depth-Cs MXU contraction instead of K+1 depth-Cin dots.
    ext = max((K - 1) * dilation, pad)
    g_ext = jnp.pad(g_pad, ((0, 0), (0, ext), (0, 0)))
    x_ext = jnp.pad(x_pad, ((0, 0), (0, ext), (0, 0)))
    taps = [g_ext[:, k * dilation:k * dilation + Tp, :] for k in range(K)]
    taps.append(x_ext[:, pad:pad + Tp, :])      # raw x aligned to tile-core rows
    a_stack = jnp.concatenate(taps, axis=-1).astype(jnp.bfloat16)     # (B, Tp, Cs)
    # TODO(synk): for very large T the resident (1, Tp, Cs) block (x2 pipeline
    # buffers) should become a manually DMA'd halo tile (pl.ANY + make_async_copy).

    # Fused [conv1 | projector] weights, conv2 weights, biases (Cout -> Cp pad).
    w1s = jnp.zeros((Cs, 2 * Cp), jnp.float32)
    w1s = w1s.at[:K * Cin, :Cout].set(
        w1.astype(jnp.float32).reshape(K * Cin, Cout))
    w1s = w1s.at[K * Cin:, Cp:Cp + Cout].set(wp.astype(jnp.float32))
    w1s = w1s.astype(jnp.bfloat16)

    w2p = jnp.zeros((K, Cp, Cp), jnp.float32).at[:, :Cout, :Cout].set(
        w2.astype(jnp.float32)).astype(jnp.bfloat16)
    if fuse_conv2:
        w2p = w2p.reshape(K * Cp, Cp)
        w2_spec = pl.BlockSpec((K * Cp, Cp), lambda b, t: (0, 0))
    else:
        w2_spec = pl.BlockSpec((K, Cp, Cp), lambda b, t: (0, 0, 0))

    b1p = jnp.zeros((1, Cp), jnp.float32).at[0, :Cout].set(b1.astype(jnp.float32))
    bfp = jnp.zeros((1, Cp), jnp.float32).at[0, :Cout].set(
        (b2 + bp).astype(jnp.float32))          # conv2 bias + projector bias

    kern = functools.partial(
        _convblock_kernel, T=T, tT=tT, K=K, dil=dilation, pad=pad, cout=Cout,
        fuse_conv2=fuse_conv2, bf16_elem=bf16_elementwise)

    # Explicit VMEM budget (double-buffered blocks + temporaries), capped at
    # 48 MiB so there is headroom even on v7x's 64 MiB physical VMEM.
    tTe = tT + 2 * pad
    est = (2 * _round_up(Tp, 16) * 128 * 2               # stacked input (x2 bufs)
           + 2 * _round_up(Cs, 16) * 2 * Cp * 2          # conv1|proj weights (x2)
           + 2 * K * Cp * Cp * 2                         # conv2 weights (x2)
           + 2 * 2 * 8 * Cp * 4                          # biases (x2 each)
           + 2 * _round_up(Cout, 8) * _round_up(tT, 128) * 4   # output tile (x2)
           + _round_up(tTe, 8) * Cp * (8 + 4 + 4)        # z + acc1 + h
           + tT * Cp * (2 * K + 16))                     # h_stack + acc2/res/y/yT
    vmem_limit = int(min(max(2 * est, 16 * 2 ** 20), 48 * 2 ** 20))

    out = pl.pallas_call(
        kern,
        out_shape=jax.ShapeDtypeStruct((B, Cout, T_out), jnp.float32),
        grid_spec=pltpu.PrefetchScalarGridSpec(
            num_scalar_prefetch=0,
            grid=(B, nT),                                # both parallel: keeps both
            in_specs=[                                   # v7x TensorCores busy
                pl.BlockSpec((1, Tp, Cs), lambda b, t: (b, 0, 0)),
                pl.BlockSpec((Cs, 2 * Cp), lambda b, t: (0, 0)),
                pl.BlockSpec((1, Cp), lambda b, t: (0, 0)),
                w2_spec,
                pl.BlockSpec((1, Cp), lambda b, t: (0, 0)),
            ],
            out_specs=pl.BlockSpec((1, Cout, tT), lambda b, t: (b, 0, t)),
        ),
        compiler_params=pltpu.CompilerParams(
            dimension_semantics=("parallel", "parallel"),
            vmem_limit_bytes=vmem_limit),
    )(a_stack, w1s, b1p, w2p, bfp)

    if T_out != T:
        out = out[:, :, :T]                              # ragged-T trim only
    return out


def conv_block_forward(x_bct, params, *, kernel_size, dilation,
                       max_time_tile=4096, fuse_conv2=None,
                       bf16_elementwise=None):
    """x_bct: (B, Cin, T) float32 (PyTorch Conv1d layout). Returns (B, Cout, T)."""
    if fuse_conv2 is None or bf16_elementwise is None:
        f_def, b_def = _default_arch_flags()
        fuse_conv2 = f_def if fuse_conv2 is None else fuse_conv2
        bf16_elementwise = b_def if bf16_elementwise is None else bf16_elementwise
    return _conv_block_forward(x_bct, params, kernel_size=kernel_size,
                               dilation=dilation, max_time_tile=max_time_tile,
                               fuse_conv2=fuse_conv2,
                               bf16_elementwise=bf16_elementwise)


# ----------------------------- pure-JAX reference ----------------------------

def _ref_same_pad_conv(x, w_oik, b, dilation):
    K = w_oik.shape[-1]
    rf = (K - 1) * dilation + 1
    pad = rf // 2
    out = jax.lax.conv_general_dilated(
        x, w_oik, window_strides=(1,), padding=[(pad, pad)],
        rhs_dilation=(dilation,), dimension_numbers=("NCH", "OIH", "NCH"))
    out = out + b[None, :, None]
    if rf % 2 == 0:                               # SamePadConv "remove" trim
        out = out[:, :, :-1]
    return out


def _ref_conv_block(x, params, dilation):
    w1, b1, w2, b2, wp, bp = params
    w1_oik = jnp.transpose(w1, (2, 1, 0))
    w2_oik = jnp.transpose(w2, (2, 1, 0))
    residual = jnp.einsum("bct,co->bot", x, wp) + bp[None, :, None]
    h = jax.nn.gelu(x, approximate=False)         # PyTorch F.gelu (erf)
    h = _ref_same_pad_conv(h, w1_oik, b1, dilation)
    h = jax.nn.gelu(h, approximate=False)
    h = _ref_same_pad_conv(h, w2_oik, b2, dilation)
    return h + residual


# ---------------------------------- demo --------------------------------------

if __name__ == "__main__":
    key = jax.random.PRNGKey(0)

    def make_params(k, K, Cin, Cout):
        ks = jax.random.split(k, 6)
        w1 = jax.random.normal(ks[0], (K, Cin, Cout), jnp.float32) * 0.2
        b1 = jax.random.normal(ks[1], (Cout,), jnp.float32) * 0.1
        w2 = jax.random.normal(ks[2], (K, Cout, Cout), jnp.float32) * 0.1
        b2 = jax.random.normal(ks[3], (Cout,), jnp.float32) * 0.1
        wp = jax.random.normal(ks[4], (Cin, Cout), jnp.float32) * 0.3
        bp = jax.random.normal(ks[5], (Cout,), jnp.float32) * 0.1
        return (w1, b1, w2, b2, wp, bp)

    # (B, Cin, Cout, T, K, dilation, max_time_tile)
    cases = [
        (2, 4, 32, 128, 3, 2, 4096),   # single 128-row time tile per batch elem
        (1, 4, 32, 256, 2, 1, 128),    # two tiles, even receptive field (rf=2)
        (1, 4, 32, 200, 3, 2, 128),    # ragged T -> padded to 256 and trimmed
    ]
    kx, kp = jax.random.split(key)
    for idx, (B, Cin, Cout, T, K, dil, mtt) in enumerate(cases):
        x = jax.random.normal(jax.random.fold_in(kx, idx), (B, Cin, T),
                              jnp.float32)
        params = make_params(jax.random.fold_in(kp, idx), K, Cin, Cout)

        out = conv_block_forward(x, params, kernel_size=K, dilation=dil,
                                 max_time_tile=mtt)
        out = jax.block_until_ready(out)

        ref = _ref_conv_block(x, params, dil)
        assert out.shape == (B, Cout, T), (out.shape, (B, Cout, T))
        # Tolerance covers the deliberate numerics relaxations (bf16 matmul
        # operands + tanh-approx second gelu) vs the f32 / exact-erf reference.
        err = float(jnp.max(jnp.abs(out - ref)))
        assert err < 1e-1, (idx, err)

    print("KERNEL_OK")
</pallas_src>

<mosaic_0001>
module attributes {stable_mosaic.version = 11 : i64} {
  func.func @_convblock_kernel(%arg0: i32, %arg1: i32, %arg2: memref<1x136x16xbf16, #tpu.memory_space<vmem>>, %arg3: memref<16x256xbf16, #tpu.memory_space<vmem>>, %arg4: memref<1x128xf32, #tpu.memory_space<vmem>>, %arg5: memref<384x128xbf16, #tpu.memory_space<vmem>>, %arg6: memref<1x128xf32, #tpu.memory_space<vmem>>, %arg7: memref<1x32x128xf32, #tpu.memory_space<vmem>>) attributes {dimension_semantics = [#tpu.dimension_semantics<parallel>, #tpu.dimension_semantics<parallel>], iteration_bounds = array<i64: 2, 1>, scalar_prefetch = 0 : i64, scratch_operands = 0 : i64, tpu.core_type = #tpu.core_type<tc>, window_params = [{transform_indices = @transform_0, window_bounds = array<i64: 1, 136, 16>}, {pipeline_mode = #tpu.pipeline_mode<synchronous>, transform_indices = @transform_1, window_bounds = array<i64: 16, 256>}, {pipeline_mode = #tpu.pipeline_mode<synchronous>, transform_indices = @transform_2, window_bounds = array<i64: 1, 128>}, {pipeline_mode = #tpu.pipeline_mode<synchronous>, transform_indices = @transform_3, window_bounds = array<i64: 384, 128>}, {pipeline_mode = #tpu.pipeline_mode<synchronous>, transform_indices = @transform_4, window_bounds = array<i64: 1, 128>}, {transform_indices = @transform_5, window_bounds = array<i64: 1, 32, 128>}]} {
    %c128_i32 = arith.constant 128 : i32
    %0 = arith.muli %arg1, %c128_i32 : i32
    %1 = tpu.assume_multiple %0, 128 : i32
    %c0 = arith.constant 0 : index
    %2 = arith.index_cast %1 : i32 to index
    %c0_0 = arith.constant 0 : index
    %3 = vector.load %arg2[%c0, %2, %c0_0] : memref<1x136x16xbf16, #tpu.memory_space<vmem>>, vector<1x132x16xbf16>
    %4 = vector.shape_cast %3 : vector<1x132x16xbf16> to vector<132x16xbf16>
    %c0_1 = arith.constant 0 : index
    %c0_2 = arith.constant 0 : index
    %5 = vector.load %arg3[%c0_1, %c0_2] : memref<16x256xbf16, #tpu.memory_space<vmem>>, vector<16x256xbf16>
    %cst = arith.constant dense<0.000000e+00> : vector<132x256xf32>
    %6 = tpu.matmul %4, %5, %cst {dimension_numbers = #tpu.dot_dimension_numbers<[1], [0], [0], [1], [0, 0, 1, 1], [], []>} : vector<132x16xbf16>, vector<16x256xbf16>, vector<132x256xf32> -> vector<132x256xf32>
    %7 = vector.extract_strided_slice %6 {offsets = [0, 0], sizes = [132, 128], strides = [1, 1]} : vector<132x256xf32> to vector<132x128xf32>
    %c0_3 = arith.constant 0 : index
    %c0_4 = arith.constant 0 : index
    %8 = vector.load %arg4[%c0_3, %c0_4] : memref<1x128xf32, #tpu.memory_space<vmem>>, vector<1x128xf32>
    %9 = vector.broadcast %8 : vector<1x128xf32> to vector<132x128xf32>
    %10 = arith.addf %7, %9 : vector<132x128xf32>
    %11 = vector.extract_strided_slice %6 {offsets = [2, 128], sizes = [128, 128], strides = [1, 1]} : vector<132x256xf32> to vector<128x128xf32>
    %12 = tpu.iota {dimensions = array<i32: 0>} : vector<132x1xi32>
    %13 = vector.broadcast %1 : i32 to vector<132x1xi32>
    %14 = arith.addi %13, %12 : vector<132x1xi32>
    %c2_i32 = arith.constant 2 : i32
    %15 = vector.broadcast %c2_i32 : i32 to vector<132x1xi32>
    %16 = arith.cmpi sge, %14, %15 : vector<132x1xi32>
    %17 = vector.broadcast %1 : i32 to vector<132x1xi32>
    %18 = arith.addi %17, %12 : vector<132x1xi32>
    %c130_i32 = arith.constant 130 : i32
    %19 = vector.broadcast %c130_i32 : i32 to vector<132x1xi32>
    %20 = arith.cmpi slt, %18, %19 : vector<132x1xi32>
    %21 = arith.andi %16, %20 : vector<132x1xi1>
    %22 = arith.truncf %10 : vector<132x128xf32> to vector<132x128xbf16>
    %23 = arith.mulf %22, %22 : vector<132x128xbf16>
    %24 = arith.mulf %22, %23 : vector<132x128xbf16>
    %cst_5 = arith.constant 4.467770e-02 : bf16
    %25 = vector.broadcast %cst_5 : bf16 to vector<132x128xbf16>
    %26 = arith.mulf %25, %24 : vector<132x128xbf16>
    %27 = arith.addf %22, %26 : vector<132x128xbf16>
    %cst_6 = arith.constant 7.968750e-01 : bf16
    %28 = vector.broadcast %cst_6 : bf16 to vector<132x128xbf16>
    %29 = arith.mulf %28, %27 : vector<132x128xbf16>
    %30 = math.tanh %29 : vector<132x128xbf16>
    %cst_7 = arith.constant 1.000000e+00 : bf16
    %31 = vector.broadcast %cst_7 : bf16 to vector<132x128xbf16>
    %32 = arith.addf %31, %30 : vector<132x128xbf16>
    %cst_8 = arith.constant 5.000000e-01 : bf16
    %33 = vector.broadcast %cst_8 : bf16 to vector<132x128xbf16>
    %34 = arith.mulf %33, %32 : vector<132x128xbf16>
    %35 = arith.mulf %22, %34 : vector<132x128xbf16>
    %cst_9 = arith.constant 0.000000e+00 : bf16
    %36 = vector.broadcast %cst_9 : bf16 to vector<132x128xbf16>
    %37 = vector.shape_cast %21 : vector<132x1xi1> to vector<132x1xi1>
    %38 = vector.broadcast %37 : vector<132x1xi1> to vector<132x128xi1>
    %39 = arith.select %38, %35, %36 : vector<132x128xi1>, vector<132x128xbf16>
    %40 = vector.extract_strided_slice %39 {offsets = [0, 0], sizes = [128, 128], strides = [1, 1]} : vector<132x128xbf16> to vector<128x128xbf16>
    %41 = vector.extract_strided_slice %39 {offsets = [2, 0], sizes = [128, 128], strides = [1, 1]} : vector<132x128xbf16> to vector<128x128xbf16>
    %42 = vector.extract_strided_slice %39 {offsets = [4, 0], sizes = [128, 128], strides = [1, 1]} : vector<132x128xbf16> to vector<128x128xbf16>
    %43 = tpu.concatenate %40, %41, %42 in 1 : vector<128x128xbf16>, vector<128x128xbf16>, vector<128x128xbf16> -> vector<128x384xbf16>
    %c0_10 = arith.constant 0 : index
    %c0_11 = arith.constant 0 : index
    %44 = vector.load %arg5[%c0_10, %c0_11] : memref<384x128xbf16, #tpu.memory_space<vmem>>, vector<384x128xbf16>
    %cst_12 = arith.constant dense<0.000000e+00> : vector<128x128xf32>
    %45 = tpu.matmul %43, %44, %cst_12 {dimension_numbers = #tpu.dot_dimension_numbers<[1], [0], [0], [1], [0, 0, 1, 1], [], []>} : vector<128x384xbf16>, vector<384x128xbf16>, vector<128x128xf32> -> vector<128x128xf32>
    %c0_13 = arith.constant 0 : index
    %c0_14 = arith.constant 0 : index
    %46 = vector.load %arg6[%c0_13, %c0_14] : memref<1x128xf32, #tpu.memory_space<vmem>>, vector<1x128xf32>
    %47 = vector.broadcast %46 : vector<1x128xf32> to vector<128x128xf32>
    %48 = arith.addf %45, %47 : vector<128x128xf32>
    %49 = arith.addf %48, %11 : vector<128x128xf32>
    %50 = tpu.transpose %49, [1, 0] : vector<128x128xf32> -> vector<128x128xf32>
    %51 = vector.extract_strided_slice %50 {offsets = [0, 0], sizes = [32, 128], strides = [1, 1]} : vector<128x128xf32> to vector<32x128xf32>
    %c0_15 = arith.constant 0 : index
    %c0_16 = arith.constant 0 : index
    %c0_17 = arith.constant 0 : index
    %52 = vector.load %arg7[%c0_15, %c0_16, %c0_17] : memref<1x32x128xf32, #tpu.memory_space<vmem>>, vector<1x32x128xf32>
    %53 = vector.shape_cast %52 : vector<1x32x128xf32> to vector<32x128xf32>
    %54 = vector.shape_cast %51 : vector<32x128xf32> to vector<1x32x128xf32>
    tpu.vector_store %arg7[%c0_15, %c0_16, %c0_17], %54 {strides = array<i32>} : memref<1x32x128xf32, #tpu.memory_space<vmem>>, vector<1x32x128xf32>,
    return
  }
  func.func @transform_0(%arg0: i32, %arg1: i32) -> (i32, i32, i32) {
    %c0_i32 = arith.constant 0 : i32
    %c0_i32_0 = arith.constant 0 : i32
    %c0_i32_1 = arith.constant 0 : i32
    return %arg0, %c0_i32, %c0_i32_0 : i32, i32, i32
  }
  func.func @transform_1(%arg0: i32, %arg1: i32) -> (i32, i32) {
    %c0_i32 = arith.constant 0 : i32
    %c0_i32_0 = arith.constant 0 : i32
    %c0_i32_1 = arith.constant 0 : i32
    return %c0_i32, %c0_i32_0 : i32, i32
  }
  func.func @transform_2(%arg0: i32, %arg1: i32) -> (i32, i32) {
    %c0_i32 = arith.constant 0 : i32
    %c0_i32_0 = arith.constant 0 : i32
    %c0_i32_1 = arith.constant 0 : i32
    return %c0_i32, %c0_i32_0 : i32, i32
  }
  func.func @transform_3(%arg0: i32, %arg1: i32) -> (i32, i32) {
    %c0_i32 = arith.constant 0 : i32
    %c0_i32_0 = arith.constant 0 : i32
    %c0_i32_1 = arith.constant 0 : i32
    return %c0_i32, %c0_i32_0 : i32, i32
  }
  func.func @transform_4(%arg0: i32, %arg1: i32) -> (i32, i32) {
    %c0_i32 = arith.constant 0 : i32
    %c0_i32_0 = arith.constant 0 : i32
    %c0_i32_1 = arith.constant 0 : i32
    return %c0_i32, %c0_i32_0 : i32, i32
  }
  func.func @transform_5(%arg0: i32, %arg1: i32) -> (i32, i32, i32) {
    %c0_i32 = arith.constant 0 : i32
    %c0_i32_0 = arith.constant 0 : i32
    return %arg0, %c0_i32, %arg1 : i32, i32, i32
  }
}

</mosaic_0001>

<bundles_post_ra>
// kernel: _conv_block_forward.1
= control target key start
LH: loop header
LB: loop body
LE: loop exit
PB: predicated region body
PF: predicated region fallthrough
CT: control target
= control target key end

     0   :  { %10 = vsyncpa [#allocation3], 0  ;;  %s2773_s0 = inlined_call_operand.vmem [shape: bf16[2,136,16], index: 0, kind: input, shape index: {}]   ;;  %s2774_s1 = inlined_call_operand.vmem [shape: bf16[16,256], index: 1, kind: input, shape index: {}]   ;;  %s2775_s2 = inlined_call_operand.vmem [shape: f32[1,128], index: 2, kind: input, shape index: {}]   ;;  %s2776_s3 = inlined_call_operand.vmem [shape: bf16[384,128], index: 3, kind: input, shape index: {}]   ;;  %s2777_s4 = inlined_call_operand.vmem [shape: f32[1,128], index: 4, kind: input, shape index: {}]   ;;  %s2778_s5 = inlined_call_operand.hbm [shape: f32[2,32,128], index: 5, kind: output, shape index: {}]  }
   0x1   :  { %12 = vsyncpa [#allocation3 + $0x1], 0  ;;  %s2175_s18 = smov 0   ;;  %s2177_s19 = smov 0  }
   0x2   :  { %s2179_s20 = smov 0   ;;  %s2181_s21 = smov 0  }
   0x3   :  { %s2183_s22 = smov 0   ;;  %s2185_s23 = smov 0  }
   0x4 LB: > { %s1757_s24 = sadd.s32 4294967295, %s2140_s23   ;;  %s1758_s25 = sadd.s32 4294967294, %s2140_s23   ;;  %s2140_s23 = sphi %s2185_s23, %s18_s23   ;;  %s2136_s22 = sphi %s2183_s22, %s2789_s22   ;;  %s2132_s21 = sphi %s2181_s21, %s2788_s21   ;;  %s2128_s20 = sphi %s2179_s20, %s2787_s20   ;;  %s2124_s19 = sphi %s2177_s19, %s2786_s19   ;;  %s2120_s18 = sphi %s2175_s18, %s2785_s18  }
   0x5   : > { %s30_s26 = sadd.s32 1, %s2136_s22  ;;  %s149_s27 = sadd.s32 1, %s2128_s20 }
   0x6   : > { %p32_p0 = scmp.ge.s32.totalorder %s30_s26, 2  ;;  %p159_p1 = scmp.ne.s32.totalorder %s2128_s20, %s2124_s19 }
   0x7   : > { %p160_p2 = scmp.eq.s32.totalorder %s1757_s24, 1  ;;  %p165_p3 = scmp.ne.s32.totalorder %s2124_s19, %s2120_s18 }
   0x8   : > { %s2791_s26 = smov (%p32_p0, %s30_s26), 0  ;;  %p166_p5 = scmp.eq.s32.totalorder %s1758_s25, 1 }
   0x9   : > { %p2215_p4 = por %p160_p2, %p159_p1  ;;  %s144_s29 = ssub.s32 %s2136_s22, %s2791_s26 }
   0xa   : > { %p1761_p6 = scmp.ge.s32.totalorder %s2140_s23, 1  ;;  %p147_p7 = scmp.eq.s32.totalorder %s144_s29, 0 }
   0xb   : > { %p2222_p8 = por %p166_p5, %p165_p3  ;;  %p204_p9 = scmp.lt.s32.totalorder %s2140_s23, 3 }
   0xc   : > { %s2228_s6 = scalar_select %p147_p7, %s2128_s20, %s149_s27  }
   0xd   : > { %p205_p10 = pnand %p1761_p6, %p204_p9 }
   0xe   : > { %p232_p11 = scmp.lt.s32.totalorder (!%p205_p10), %s2132_s21, 1  ;;  %s229_s14 = sand.u32 (!%p205_p10), 1, %s2124_s19  }
   0xf   : > { %208 = sbr.rel (%p205_p10) target bundleno = 596 (0x254), region = 40  ;;  %s1762_s16 = sshll.u32 (!%p205_p10), %s229_s14, 5 }
  0x10   : > { %s231_s17 = scalar_lea.vmem (!%p205_p10), [#allocation2], %s1762_s16  ;;  %s1957_s24 = sshll.u32 (!%p205_p10), %s2132_s21, 5 }
  0x11   : > { %s1679_s29 = scalar_lea.hbm (!%p205_p10), %s2778_s5, %s1957_s24  ;;  %s1680_s7 = sshll.u32 (!%p205_p10), %s231_s17, 4  ;;  %s1681_s7 = int_to_ptr.vmem [resolvable:$true] %s1680_s7 }
  0x12   : > { %s1682_s8 = sshll.u32 (!%p205_p10), %s1679_s29, 4  ;;  %s1667_s9 = scalar_lea.sflag (!%p205_p10), [#allocation3], %s229_s14  ;;  %s1683_s8 = int_to_ptr.hbm [resolvable:$true] %s1682_s8 }
  0x13   : > { %s2076_s10 = sshra.s32 (!%p205_p10), %s1683_s8, 4  ;;  %s2077_s10 = int_to_ptr.hbm [resolvable:$true] %s2076_s10 }
  0x14   : > { %v1798_v0 = vld [vmem:[%s2774_s1] sm:$0xf]  ;;  %v1932_v1 = vld [vmem:[%s2774_s1 + $0x4] sm:$0xf0]  ;;  %s233_s11 = scalar_select %p232_p11, %s2132_s21, 1  ;;  %vm315_vm0 = vcmask 130048  }
  0x15   : > { %v1799_v2 = vor.u32 %v1932_v1, %v1798_v0  ;;  %v2273_v14 = vld [vmem:[%s2775_s2] ss:$0 sm:$0xff]  ;;  %vm2142_vm3 = vmmov 1   ;;  %vm1152_vm5 = vcmask 1046528   ;;  %vm1178_vm6 = vcmask 1045504   ;;  %p2083_p1 = scmp.lt.s32.totalorder %s2077_s10, %s2778_s5 }
  0x16   : > { %s1961_s12 = smul.u32 68, %s233_s11  ;;  %vm2559_vm4 = vmpackc.low %vm2142_vm3, %vm2142_vm3  ;;  %s2078_s11 = scalar_lea.hbm %s2077_s10, 32 }
  0x17   : > { %350 = vmatpush.bf16.msra.mxu0 %v1799_v2  ;;  %1958 = vmatpush.bf16.msra.mxu1 %v1799_v2  ;;  %p2079_p12 = scmp.ne.s32.totalorder %s2077_s10, %s2078_s11 }
  0x18   : > { %1959 = vmatpush.bf16.msra.mxu2 %v1799_v2  ;;  %1960 = vmatpush.bf16.msra.mxu3 %v1799_v2  ;;  %s2241_s15 = scalar_lea.vmem %s2773_s0, %s1961_s12 }
  0x19   : > { %v2244_v3 = vld [vmem:[%s2241_s15] sm:$0xff]  ;;  %v1925_v4 = vld [vmem:[%s2241_s15 + $0x10] sm:$0xff]  ;;  %v1930_v6 = vld [vmem:[%s2241_s15 + $0x38] sm:$0xff]  ;;  %p2080_p13 = pnand %p2079_p12, %p2215_p4 }
  0x1a   : > { %v1927_v5 = vld [vmem:[%s2241_s15 + $0x20] sm:$0xff]  ;;  %1804 = vmatmul.msk.bf16.vlgmr.msra.gmra.mxu0 %vm315_vm0, %v2244_v3  ;;  %1806 = vmatmul.msk.bf16.vlgmr.msra.gmra.mxu1 %vm315_vm0, %v1925_v4  ;;  %v2256_v9 = vld [vmem:[%s2241_s15 + $0x8] sm:$0xff]  ;;  %v1926_v10 = vld [vmem:[%s2241_s15 + $0x18] sm:$0xff] }
  0x1b   : > { %1808 = vmatmul.msk.bf16.vlgmr.msra.gmra.mxu2 %vm315_vm0, %v1927_v5  ;;  %1811 = vmatmul.msk.bf16.vlgmr.msra.gmra.mxu3 %vm315_vm0, %v1930_v6  ;;  %v259_v7 = vld [vmem:[%s2241_s15 + $0x40] sm:$0x3]  ;;  %v1928_v11 = vld [vmem:[%s2241_s15 + $0x28] sm:$0xff]  ;;  %v1929_v13 = vld [vmem:[%s2241_s15 + $0x30] sm:$0xff]  ;;  %p2081_p0 = pneg %p2080_p13 }
  0x1c   : > { %v295_v8 = vunpack.c.l.b16 %v259_v7 }
  0x1e   : > { %v2260_v12 = vpack.c.b16 %v295_v8, %v295_v8 }
  0x2a   : > { %1805 = vmatmul.msk.bf16.gmra.mxu0 %vm315_vm0, %v2256_v9  ;;  %1807 = vmatmul.msk.bf16.gmra.mxu1 %vm315_vm0, %v1926_v10 }
  0x2b   : > { %1809 = vmatmul.msk.bf16.gmra.mxu2 %vm315_vm0, %v1928_v11  ;;  %1812 = vmatmul.msk.bf16.gmra.mxu3 %vm315_vm0, %v2260_v12 }
  0x3b   : > { %1810 = vmatmul.msk.bf16.gmra.mxu2 %vm315_vm0, %v1929_v13 }
  0x97   : > { %v352_v15 = vpop.f32.mrf.mxu0  ;;  %v362_v16 = vpop.f32.mrf.mxu1 }
  0x98   : > { %v453_v17 = vadd.f32 %v2273_v14, %v352_v15  ;;  %v457_v18 = vadd.f32 %v2273_v14, %v362_v16 }
  0x9a   : > { %v557_v19 = vpack.c.bf16 %v453_v17, %v453_v17  ;;  %v561_v20 = vpack.c.bf16 %v457_v18, %v457_v18 }
  0x9c   : > { %v2277_v21 = vunpack.c.l.bf16 %v557_v19  ;;  %v2279_v22 = vunpack.c.l.bf16 %v561_v20 }
  0x9e   : > { %v591_v23 = vmul.f32 %v2277_v21, %v2277_v21  ;;  %v595_v24 = vmul.f32 %v2279_v22, %v2279_v22  ;;  %v372_v25 = vpop.f32.mrf.mxu2 }
  0x9f   : > { %v461_v26 = vadd.f32 %v2273_v14, %v372_v25  ;;  %v354_v27 = vpop.f32.mrf.mxu0  ;;  %v364_v28 = vpop.f32.mrf.mxu1 }
  0xa0   : > { %v608_v29 = vpack.c.bf16 %v591_v23, %v591_v23  ;;  %v612_v30 = vpack.c.bf16 %v595_v24, %v595_v24  ;;  %v454_v31 = vadd.f32 %v2273_v14, %v354_v27  ;;  %v458_v32 = vadd.f32 %v2273_v14, %v364_v28 }
  0xa1   : > { %v565_v33 = vpack.c.bf16 %v461_v26, %v461_v26 }
  0xa2   : > { %v625_v34 = vunpack.c.l.bf16 %v608_v29  ;;  %v629_v35 = vunpack.c.l.bf16 %v612_v30  ;;  %v558_v36 = vpack.c.bf16 %v454_v31, %v454_v31  ;;  %v562_v37 = vpack.c.bf16 %v458_v32, %v458_v32 }
  0xa3   : > { %v2288_v38 = vunpack.c.l.bf16 %v565_v33 }
  0xa4   : > { %v642_v39 = vmul.f32 %v625_v34, %v2277_v21  ;;  %v646_v40 = vmul.f32 %v629_v35, %v2279_v22  ;;  %v2292_v41 = vunpack.c.l.bf16 %v558_v36  ;;  %v2294_v42 = vunpack.c.l.bf16 %v562_v37 }
  0xa5   : > { %v599_v43 = vmul.f32 %v2288_v38, %v2288_v38 }
  0xa6   : > { %v659_v44 = vpack.c.bf16 %v642_v39, %v642_v39  ;;  %v663_v45 = vpack.c.bf16 %v646_v40, %v646_v40  ;;  %v592_v46 = vmul.f32 %v2292_v41, %v2292_v41  ;;  %v596_v47 = vmul.f32 %v2294_v42, %v2294_v42  ;;  %v374_v48 = vpop.f32.mrf.mxu2 }
  0xa7   : > { %v616_v49 = vpack.c.bf16 %v599_v43, %v599_v43  ;;  %v462_v50 = vadd.f32 %v2273_v14, %v374_v48  ;;  %v357_v51 = vpop.f32.mrf.mxu0  ;;  %v367_v52 = vpop.f32.mrf.mxu1 }
  0xa8   : > { %v676_v53 = vunpack.c.l.bf16 %v659_v44  ;;  %v680_v54 = vunpack.c.l.bf16 %v663_v45  ;;  %v609_v55 = vpack.c.bf16 %v592_v46, %v592_v46  ;;  %v613_v56 = vpack.c.bf16 %v596_v47, %v596_v47 }
  0xa9   : > { %v633_v57 = vunpack.c.l.bf16 %v616_v49  ;;  %v566_v58 = vpack.c.bf16 %v462_v50, %v462_v50  ;;  %v455_v59 = vadd.f32 %v2273_v14, %v357_v51  ;;  %v459_v60 = vadd.f32 %v2273_v14, %v367_v52  ;;  %v2323_v51 = vpop.f32.mrf.mxu3 }
  0xaa   : > { %v693_v61 = vmul.f32 0.044677734, %v676_v53  ;;  %v697_v62 = vmul.f32 0.044677734, %v680_v54  ;;  %v626_v63 = vunpack.c.l.bf16 %v609_v55  ;;  %v630_v0 = vunpack.c.l.bf16 %v613_v56 }
  0xab   : > { %v650_v1 = vmul.f32 %v633_v57, %v2288_v38  ;;  %v2306_v2 = vunpack.c.l.bf16 %v566_v58  ;;  %v559_v4 = vpack.c.bf16 %v455_v59, %v455_v59  ;;  %v563_v5 = vpack.c.bf16 %v459_v60, %v459_v60 }
  0xac   : > { %v710_v6 = vpack.c.bf16 %v693_v61, %v693_v61  ;;  %v714_v7 = vpack.c.bf16 %v697_v62, %v697_v62  ;;  %v643_v8 = vmul.f32 %v626_v63, %v2292_v41  ;;  %v647_v10 = vmul.f32 %v630_v0, %v2294_v42  ;;  %v1940_v63 = vld [vmem:[%s2776_s3 + $0x38] sm:$0xff] }
  0xad   : > { %v667_v11 = vpack.c.bf16 %v650_v1, %v650_v1  ;;  %v600_v13 = vmul.f32 %v2306_v2, %v2306_v2  ;;  %v2312_v15 = vunpack.c.l.bf16 %v559_v4  ;;  %v2314_v16 = vunpack.c.l.bf16 %v563_v5  ;;  %1400 = vmatpush.bf16.msrb.mxu2 %v1940_v63 }
  0xae   : > { %v727_v17 = vunpack.c.l.bf16 %v710_v6  ;;  %v731_v18 = vunpack.c.l.bf16 %v714_v7  ;;  %v660_v19 = vpack.c.bf16 %v643_v8, %v643_v8  ;;  %v664_v20 = vpack.c.bf16 %v647_v10, %v647_v10  ;;  %v377_v23 = vpop.f32.mrf.mxu2 }
  0xaf   : > { %v684_v24 = vunpack.c.l.bf16 %v667_v11  ;;  %v617_v25 = vpack.c.bf16 %v600_v13, %v600_v13  ;;  %v593_v26 = vmul.f32 %v2312_v15, %v2312_v15  ;;  %v597_v27 = vmul.f32 %v2314_v16, %v2314_v16 }
  0xb0   : > { %v744_v28 = vadd.f32 %v727_v17, %v2277_v21  ;;  %v748_v29 = vadd.f32 %v731_v18, %v2279_v22  ;;  %v677_v30 = vunpack.c.l.bf16 %v660_v19  ;;  %v681_v31 = vunpack.c.l.bf16 %v664_v20 }
  0xb1   : > { %v701_v32 = vmul.f32 0.044677734, %v684_v24  ;;  %v634_v33 = vunpack.c.l.bf16 %v617_v25  ;;  %v610_v34 = vpack.c.bf16 %v593_v26, %v593_v26  ;;  %v614_v35 = vpack.c.bf16 %v597_v27, %v597_v27  ;;  %v1939_v25 = vld [vmem:[%s2776_s3 + $0x30] sm:$0xff] }
  0xb2   : > { %v761_v36 = vpack.c.bf16 %v744_v28, %v744_v28  ;;  %v765_v37 = vpack.c.bf16 %v748_v29, %v748_v29  ;;  %v694_v39 = vmul.f32 0.044677734, %v677_v30  ;;  %v698_v40 = vmul.f32 0.044677734, %v681_v31  ;;  %v359_v30 = vpop.f32.mrf.mxu0  ;;  %1401 = vmatpush.bf16.msrb.mxu2 %v1939_v25 }
  0xb3   : > { %v718_v43 = vpack.c.bf16 %v701_v32, %v701_v32  ;;  %v651_v44 = vmul.f32 %v634_v33, %v2306_v2  ;;  %v627_v45 = vunpack.c.l.bf16 %v610_v34  ;;  %v631_v46 = vunpack.c.l.bf16 %v614_v35 }
  0xb4   : > { %v778_v47 = vunpack.c.l.bf16 %v761_v36  ;;  %v782_v48 = vunpack.c.l.bf16 %v765_v37  ;;  %v711_v49 = vpack.c.bf16 %v694_v39, %v694_v39  ;;  %v715_v50 = vpack.c.bf16 %v698_v40, %v698_v40  ;;  %v2339_v39 = vpop.f32.mrf.mxu3 }
  0xb5   : > { %v735_v52 = vunpack.c.l.bf16 %v718_v43  ;;  %v668_v53 = vpack.c.bf16 %v651_v44, %v651_v44  ;;  %v644_v54 = vmul.f32 %v627_v45, %v2312_v15  ;;  %v648_v55 = vmul.f32 %v631_v46, %v2314_v16 }
  0xb6   : > { %v795_v56 = vmul.f32 0.796875, %v778_v47  ;;  %v728_v57 = vunpack.c.l.bf16 %v711_v49  ;;  %v732_v58 = vunpack.c.l.bf16 %v715_v50  ;;  %v799_v0 = vmul.f32 0.796875, %v782_v48  ;;  %v2333_v5 = vpop.f32.mrf.mxu2 }
  0xb7   : > { %v752_v59 = vadd.f32 %v735_v52, %v2288_v38  ;;  %v685_v60 = vunpack.c.l.bf16 %v668_v53  ;;  %v661_v61 = vpack.c.bf16 %v644_v54, %v644_v54  ;;  %v665_v62 = vpack.c.bf16 %v648_v55, %v648_v55  ;;  %v369_v55 = vpop.f32.mrf.mxu1 }
  0xb8   : > { %v745_v1 = vadd.f32 %v728_v57, %v2292_v41  ;;  %v749_v4 = vadd.f32 %v732_v58, %v2294_v42  ;;  %v812_v11 = vpack.c.bf16 %v795_v56, %v795_v56  ;;  %v816_v26 = vpack.c.bf16 %v799_v0, %v799_v0  ;;  %v1937_v0 = vld [vmem:[%s2776_s3 + $0x20] sm:$0xff] }
  0xb9   : > { %v769_v6 = vpack.c.bf16 %v752_v59, %v752_v59  ;;  %v702_v7 = vmul.f32 0.044677734, %v685_v60  ;;  %v678_v8 = vunpack.c.l.bf16 %v661_v61  ;;  %v682_v10 = vunpack.c.l.bf16 %v665_v62 }
  0xba   : > { %v762_v13 = vpack.c.bf16 %v745_v1, %v745_v1  ;;  %v766_v17 = vpack.c.bf16 %v749_v4, %v749_v4  ;;  %v463_v29 = vadd.f32 %v2273_v14, %v377_v23  ;;  %v456_v45 = vadd.f32 %v2273_v14, %v359_v30  ;;  %v1938_v23 = vld [vmem:[%s2776_s3 + $0x28] sm:$0xff] }
  0xbb   : > { %v786_v18 = vunpack.c.l.bf16 %v769_v6  ;;  %v719_v19 = vpack.c.bf16 %v702_v7, %v702_v7  ;;  %v695_v20 = vmul.f32 0.044677734, %v678_v8  ;;  %v699_v24 = vmul.f32 0.044677734, %v682_v10  ;;  %1402 = vmatpush.bf16.msrb.mxu2 %v1938_v23 }
  0xbc   : > { %v779_v27 = vunpack.c.l.bf16 %v762_v13  ;;  %v783_v28 = vunpack.c.l.bf16 %v766_v17  ;;  %v567_v37 = vpack.c.bf16 %v463_v29, %v463_v29  ;;  %v829_v46 = vunpack.c.l.bf16 %v812_v11 }
  0xbd   : > { %v803_v31 = vmul.f32 0.796875, %v786_v18  ;;  %v736_v32 = vunpack.c.l.bf16 %v719_v19  ;;  %v712_v33 = vpack.c.bf16 %v695_v20, %v695_v20  ;;  %v716_v36 = vpack.c.bf16 %v699_v24, %v699_v24  ;;  %v2362_v19 = vpop.f32.mrf.mxu3 }
  0xbe   : > { %v796_v34 = vmul.f32 0.796875, %v779_v27  ;;  %v800_v35 = vmul.f32 0.796875, %v783_v28  ;;  %v833_v47 = vunpack.c.l.bf16 %v816_v26  ;;  %v2346_v49 = vunpack.c.l.bf16 %v567_v37  ;;  %v382_v59 = vpop.f32.mrf.mxu2  ;;  %v1936_v26 = vld [vmem:[%s2776_s3 + $0x18] sm:$0xff] }
  0xbf   : > { %v820_v40 = vpack.c.bf16 %v803_v31, %v803_v31  ;;  %v753_v43 = vadd.f32 %v736_v32, %v2306_v2  ;;  %v729_v44 = vunpack.c.l.bf16 %v712_v33  ;;  %v733_v48 = vunpack.c.l.bf16 %v716_v36  ;;  %1403 = vmatpush.bf16.msrb.mxu2 %v1937_v0  ;;  %v1947_v0 = vld [vmem:[%s2776_s3 + $0x70] sm:$0xff] }
  0xc0   : > { %v813_v50 = vpack.c.bf16 %v796_v34, %v796_v34  ;;  %v560_v54 = vpack.c.bf16 %v456_v45, %v456_v45  ;;  %v817_v56 = vpack.c.bf16 %v800_v35, %v800_v35  ;;  %v601_v58 = vmul.f32 %v2346_v49, %v2346_v49 }
  0xc1   : > { %v770_v52 = vpack.c.bf16 %v753_v43, %v753_v43  ;;  %v746_v53 = vadd.f32 %v729_v44, %v2312_v15  ;;  %v750_v57 = vadd.f32 %v733_v48, %v2314_v16  ;;  %v837_v60 = vunpack.c.l.bf16 %v820_v40  ;;  %v1948_v40 = vld [vmem:[%s2776_s3 + $0x78] sm:$0xff] }
  0xc2   : > { %v2352_v63 = vunpack.c.l.bf16 %v560_v54  ;;  %2022 = vtanh.f32 %v829_v46  ;;  %v618_v4 = vpack.c.bf16 %v601_v58, %v601_v58  ;;  %v460_v6 = vadd.f32 %v2273_v14, %v369_v55  ;;  %v1956_v43 = vld [vmem:[%s2776_s3 + $0xb8] sm:$0xff]  ;;  %v1935_v46 = vld [vmem:[%s2776_s3 + $0x10] sm:$0xff]  ;;  %1449 = vmatpush.bf16.msrb.mxu3 %v1948_v40 }
  0xc3   : > { %v787_v61 = vunpack.c.l.bf16 %v770_v52  ;;  %v763_v62 = vpack.c.bf16 %v746_v53, %v746_v53  ;;  %v767_v1 = vpack.c.bf16 %v750_v57, %v750_v57  ;;  %2024 = vtanh.f32 %v833_v47  ;;  %1404 = vmatpush.bf16.msrb.mxu2 %v1936_v26  ;;  %1498 = vmatpush.bf16.msrb.mxu0 %v1956_v43 }
  0xc4   : > { %v830_v7 = vunpack.c.l.bf16 %v813_v50  ;;  %v594_v10 = vmul.f32 %v2352_v63, %v2352_v63  ;;  %v635_v13 = vunpack.c.l.bf16 %v618_v4  ;;  %v564_v17 = vpack.c.bf16 %v460_v6, %v460_v6 }
  0xc5   : > { %v804_v8 = vmul.f32 0.796875, %v787_v61  ;;  %v780_v11 = vunpack.c.l.bf16 %v763_v62  ;;  %v464_v18 = vadd.f32 %v2273_v14, %v2333_v5  ;;  %2026 = vtanh.f32 %v837_v60  ;;  %v394_v4 = vpop.f32.mrf.mxu3 }
  0xc6   : > { %v834_v20 = vunpack.c.l.bf16 %v817_v56  ;;  %v611_v24 = vpack.c.bf16 %v594_v10, %v594_v10  ;;  %v465_v25 = vadd.f32 %v2273_v14, %v382_v59  ;;  %v784_v27 = vunpack.c.l.bf16 %v767_v1  ;;  %v384_v53 = vpop.f32.mrf.mxu2  ;;  %v1955_v1 = vld [vmem:[%s2776_s3 + $0xb0] sm:$0xff]  ;;  %1450 = vmatpush.bf16.msrb.mxu3 %v1947_v0  ;;  %v1945_v4 = vld [vmem:[%s2776_s3 + $0x60] sm:$0xff] }
  0xc7   : > { %v652_v28 = vmul.f32 %v635_v13, %v2346_v49  ;;  %v2369_v29 = vunpack.c.l.bf16 %v564_v17  ;;  %v568_v30 = vpack.c.bf16 %v464_v18, %v464_v18  ;;  %2028 = vtanh.f32 %v830_v7  ;;  %1405 = vmatpush.bf16.msrb.mxu2 %v1935_v46  ;;  %1499 = vmatpush.bf16.msrb.mxu0 %v1955_v1  ;;  %v1933_v46 = vld [vmem:[%s2776_s3] sm:$0xff] }
  0xc8   : > { %v821_v31 = vpack.c.bf16 %v804_v8, %v804_v8  ;;  %v628_v5 = vunpack.c.l.bf16 %v611_v24  ;;  %v569_v32 = vpack.c.bf16 %v465_v25, %v465_v25  ;;  %v2371_v33 = vpop.eup %2022  ;;  %v2373_v34 = vmul.f32 0.796875, %v780_v11  ;;  %v1934_v11 = vld [vmem:[%s2776_s3 + $0x8] sm:$0xff] }
  0xc9   : > { %v669_v35 = vpack.c.bf16 %v652_v28, %v652_v28  ;;  %v598_v36 = vmul.f32 %v2369_v29, %v2369_v29  ;;  %v2377_v37 = vunpack.c.l.bf16 %v568_v30  ;;  %v2385_v44 = vpop.eup %2024  ;;  %2030 = vtanh.f32 %v834_v20 }
  0xca   : > { %v645_v45 = vmul.f32 %v628_v5, %v2352_v63  ;;  %v2388_v23 = vunpack.c.l.bf16 %v569_v32  ;;  %v2393_v47 = vmul.f32 0.796875, %v784_v27  ;;  %v2399_v55 = vunpack.c.l.bf16 %v821_v31 }
  0xcb   : > { %v686_v48 = vunpack.c.l.bf16 %v669_v35  ;;  %v615_v50 = vpack.c.bf16 %v598_v36, %v598_v36  ;;  %v602_v52 = vmul.f32 %v2377_v37, %v2377_v37  ;;  %v2397_v54 = vpop.eup %2026  ;;  %v467_v58 = vadd.f32 %v2273_v14, %v2323_v51  ;;  %1406 = vmatpush.bf16.msrb.mxu2 %v1934_v11  ;;  %v1946_v35 = vld [vmem:[%s2776_s3 + $0x68] sm:$0xff] }
  0xcc   : > { %v662_v56 = vpack.c.bf16 %v645_v45, %v645_v45  ;;  %v603_v57 = vmul.f32 %v2388_v23, %v2388_v23  ;;  %v814_v59 = vpack.c.bf16 %v2373_v34, %v2373_v34  ;;  %v466_v10 = vadd.f32 %v2273_v14, %v384_v53  ;;  %1451 = vmatpush.bf16.msrb.mxu3 %v1946_v35 }
  0xcd   : > { %v703_v60 = vmul.f32 0.044677734, %v686_v48  ;;  %v632_v61 = vunpack.c.l.bf16 %v615_v50  ;;  %v619_v62 = vpack.c.bf16 %v602_v52, %v602_v52  ;;  %v2413_v6 = vpop.eup %2028  ;;  %v571_v8 = vpack.c.bf16 %v467_v58, %v467_v58 }
  0xce   : > { %v679_v7 = vunpack.c.l.bf16 %v662_v56  ;;  %v620_v51 = vpack.c.bf16 %v603_v57, %v603_v57  ;;  %v468_v20 = vadd.f32 %v2273_v14, %v2339_v39  ;;  %v570_v28 = vpack.c.bf16 %v466_v10, %v466_v10  ;;  %v1954_v39 = vld [vmem:[%s2776_s3 + $0xa8] sm:$0xff] }
  0xcf   : > { %v720_v13 = vpack.c.bf16 %v703_v60, %v703_v60  ;;  %v649_v17 = vmul.f32 %v632_v61, %v2369_v29  ;;  %v636_v18 = vunpack.c.l.bf16 %v619_v62  ;;  %v2422_v24 = vpop.eup %2030  ;;  %v2424_v27 = vunpack.c.l.bf16 %v571_v8  ;;  %1500 = vmatpush.bf16.msrb.mxu0 %v1954_v39  ;;  %1407 = vmatpush.bf16.msrb.mxu2 %v1933_v46 }
  0xd0   : > { %v696_v25 = vmul.f32 0.044677734, %v679_v7  ;;  %v637_v26 = vunpack.c.l.bf16 %v620_v51  ;;  %v572_v32 = vpack.c.bf16 %v468_v20, %v468_v20  ;;  %v2436_v45 = vunpack.c.l.bf16 %v570_v28  ;;  %1452 = vmatpush.bf16.msrb.mxu3 %v1945_v4 }
  0xd1   : > { %v737_v30 = vunpack.c.l.bf16 %v720_v13  ;;  %v666_v31 = vpack.c.bf16 %v649_v17, %v649_v17  ;;  %v653_v5 = vmul.f32 %v636_v18, %v2377_v37  ;;  %v605_v43 = vmul.f32 %v2424_v27, %v2424_v27 }
  0xd2   : > { %v713_v36 = vpack.c.bf16 %v696_v25, %v696_v25  ;;  %v654_v40 = vmul.f32 %v637_v26, %v2388_v23  ;;  %v2442_v53 = vunpack.c.l.bf16 %v572_v32  ;;  %v604_v60 = vmul.f32 %v2436_v45, %v2436_v45 }
  0xd3   : > { %v754_v48 = vadd.f32 %v737_v30, %v2346_v49  ;;  %v683_v50 = vunpack.c.l.bf16 %v666_v31  ;;  %v670_v52 = vpack.c.bf16 %v653_v5, %v653_v5  ;;  %v622_v58 = vpack.c.bf16 %v605_v43, %v605_v43 }
  0xd4   : > { %v730_v56 = vunpack.c.l.bf16 %v713_v36  ;;  %v671_v57 = vpack.c.bf16 %v654_v40, %v654_v40  ;;  %v606_v1 = vmul.f32 %v2442_v53, %v2442_v53  ;;  %v621_v10 = vpack.c.bf16 %v604_v60, %v604_v60 }
  0xd5   : > { %v771_v61 = vpack.c.bf16 %v754_v48, %v754_v48  ;;  %v700_v62 = vmul.f32 0.044677734, %v683_v50  ;;  %v687_v0 = vunpack.c.l.bf16 %v670_v52  ;;  %v639_v8 = vunpack.c.l.bf16 %v622_v58 }
  0xd6   : > { %v747_v7 = vadd.f32 %v730_v56, %v2352_v63  ;;  %v688_v51 = vunpack.c.l.bf16 %v671_v57  ;;  %v818_v11 = vpack.c.bf16 %v2393_v47, %v2393_v47  ;;  %v623_v18 = vpack.c.bf16 %v606_v1, %v606_v1 }
  0xd7   : > { %v717_v13 = vpack.c.bf16 %v700_v62, %v700_v62  ;;  %v704_v17 = vmul.f32 0.044677734, %v687_v0  ;;  %v656_v26 = vmul.f32 %v639_v8, %v2424_v27  ;;  %v638_v28 = vunpack.c.l.bf16 %v621_v10 }
  0xd8   : > { %v764_v20 = vpack.c.bf16 %v747_v7, %v747_v7  ;;  %v705_v25 = vmul.f32 0.044677734, %v688_v51  ;;  %v788_v30 = vunpack.c.l.bf16 %v771_v61  ;;  %v640_v32 = vunpack.c.l.bf16 %v623_v18 }
  0xd9   : > { %v734_v31 = vunpack.c.l.bf16 %v717_v13  ;;  %v721_v5 = vpack.c.bf16 %v704_v17, %v704_v17  ;;  %v673_v36 = vpack.c.bf16 %v656_v26, %v656_v26  ;;  %v655_v40 = vmul.f32 %v638_v28, %v2436_v45  ;;  %v1931_v28 = vld [vmem:[%s2774_s1 + $0x4] sm:$0xf] }
  0xda   : > { %v781_v35 = vunpack.c.l.bf16 %v764_v20  ;;  %v722_v39 = vpack.c.bf16 %v705_v25, %v705_v25  ;;  %v831_v47 = vunpack.c.l.bf16 %v814_v59  ;;  %v657_v48 = vmul.f32 %v640_v32, %v2442_v53 }
  0xdb   : > { %v751_v43 = vadd.f32 %v734_v31, %v2369_v29  ;;  %v738_v46 = vunpack.c.l.bf16 %v721_v5  ;;  %v690_v56 = vunpack.c.l.bf16 %v673_v36  ;;  %v672_v57 = vpack.c.bf16 %v655_v40, %v655_v40 }
  0xdc   : > { %v798_v50 = vmul.f32 0.796875, %v781_v35  ;;  %v739_v52 = vunpack.c.l.bf16 %v722_v39  ;;  %v805_v58 = vmul.f32 0.796875, %v788_v30  ;;  %v674_v62 = vpack.c.bf16 %v657_v48, %v657_v48  ;;  %v1800_v30 = vld [vmem:[%s2774_s1 + $0x8] sm:$0xf0] }
  0xdd   : > { %v768_v60 = vpack.c.bf16 %v751_v43, %v751_v43  ;;  %v755_v61 = vadd.f32 %v738_v46, %v2377_v37  ;;  %v707_v4 = vmul.f32 0.044677734, %v690_v56  ;;  %v689_v34 = vunpack.c.l.bf16 %v672_v57 }
  0xde   : > { %v815_v0 = vpack.c.bf16 %v798_v50, %v798_v50  ;;  %v756_v1 = vadd.f32 %v739_v52, %v2388_v23  ;;  %2032 = vtanh.f32 %v831_v47  ;;  %v691_v51 = vunpack.c.l.bf16 %v674_v62 }
  0xdf   : > { %v785_v59 = vunpack.c.l.bf16 %v768_v60  ;;  %v772_v7 = vpack.c.bf16 %v755_v61, %v755_v61  ;;  %v724_v13 = vpack.c.bf16 %v707_v4, %v707_v4  ;;  %v706_v17 = vmul.f32 0.044677734, %v689_v34 }
  0xe0   : > { %v832_v8 = vunpack.c.l.bf16 %v815_v0  ;;  %v773_v10 = vpack.c.bf16 %v756_v1, %v756_v1  ;;  %v708_v25 = vmul.f32 0.044677734, %v691_v51  ;;  %v469_v26 = vadd.f32 %v2273_v14, %v2362_v19 }
  0xe1   : > { %v802_v18 = vmul.f32 0.796875, %v785_v59  ;;  %v789_v20 = vunpack.c.l.bf16 %v772_v7  ;;  %v822_v31 = vpack.c.bf16 %v805_v58, %v805_v58  ;;  %v741_v32 = vunpack.c.l.bf16 %v724_v13  ;;  %v1953_v59 = vld [vmem:[%s2776_s3 + $0xa0] sm:$0xff] }
  0xe2   : > { %v790_v5 = vunpack.c.l.bf16 %v773_v10  ;;  %v723_v35 = vpack.c.bf16 %v706_v17, %v706_v17  ;;  %v725_v40 = vpack.c.bf16 %v708_v25, %v708_v25  ;;  %v573_v47 = vpack.c.bf16 %v469_v26, %v469_v26  ;;  %1501 = vmatpush.bf16.msrb.mxu0 %v1953_v59 }
  0xe3   : > { %v819_v39 = vpack.c.bf16 %v802_v18, %v802_v18  ;;  %v806_v36 = vmul.f32 0.796875, %v789_v20  ;;  %v758_v46 = vadd.f32 %v741_v32, %v2424_v27  ;;  %v1803_v19 = vor.u32 %v1931_v28, %v1800_v30 }
  0xe4   : > { %v807_v43 = vmul.f32 0.796875, %v790_v5  ;;  %v740_v14 = vunpack.c.l.bf16 %v723_v35  ;;  %v2033_v48 = vpop.eup %2032  ;;  %v835_v50 = vunpack.c.l.bf16 %v818_v11  ;;  %2034 = vtanh.f32 %v832_v8 }
  0xe5   : > { %v742_v52 = vunpack.c.l.bf16 %v725_v40  ;;  %v2472_v56 = vunpack.c.l.bf16 %v573_v47  ;;  %v839_v57 = vunpack.c.l.bf16 %v822_v31  ;;  %v823_v58 = vpack.c.bf16 %v806_v36, %v806_v36  ;;  %403 = vmatpush.bf16.msrb.mxu1 %v1803_v19 }
  0xe6   : > { %v775_v60 = vpack.c.bf16 %v758_v46, %v758_v46  ;;  %v757_v61 = vadd.f32 %v740_v14, %v2436_v45  ;;  %2036 = vtanh.f32 %v2399_v55  ;;  %v836_v1 = vunpack.c.l.bf16 %v819_v39 }
  0xe7   : > { %v759_v62 = vadd.f32 %v742_v52, %v2442_v53  ;;  %v607_v0 = vmul.f32 %v2472_v56, %v2472_v56  ;;  %v824_v4 = vpack.c.bf16 %v807_v43, %v807_v43  ;;  %v470_v34 = vlaneseq  ;;  %v1943_v52 = vld [vmem:[%s2776_s3 + $0x50] sm:$0xff] }
  0xe8   : > { %v774_v11 = vpack.c.bf16 %v757_v61, %v757_v61  ;;  %2038 = vtanh.f32 %v835_v50  ;;  %v863_v8 = vpack.c.bf16 %v2371_v33, %v2371_v33  ;;  %1813 = vmatmul.msk.bf16.vlgmr.msrb.gmra.mxu1 %vm315_vm0, %v2244_v3  ;;  %v840_v55 = vunpack.c.l.bf16 %v823_v58  ;;  %v1944_v3 = vld [vmem:[%s2776_s3 + $0x58] sm:$0xff] }
  0xe9   : > { %v776_v7 = vpack.c.bf16 %v759_v62, %v759_v62  ;;  %v624_v51 = vpack.c.bf16 %v607_v0, %v607_v0  ;;  %2040 = vtanh.f32 %v839_v57  ;;  %v792_v10 = vunpack.c.l.bf16 %v775_v60  ;;  %v1952_v33 = vld [vmem:[%s2776_s3 + $0x98] sm:$0xff]  ;;  %1453 = vmatpush.bf16.msrb.mxu3 %v1944_v3  ;;  %v1951_v57 = vld [vmem:[%s2776_s3 + $0x90] sm:$0xff] }
  0xea   : > { %v791_v13 = vunpack.c.l.bf16 %v774_v11  ;;  %v2035_v17 = vpop.eup %2034  ;;  %v864_v25 = vpack.c.bf16 %v2413_v6, %v2413_v6  ;;  %v880_v26 = vunpack.c.l.bf16 %v863_v8  ;;  %2042 = vtanh.f32 %v836_v1  ;;  %1502 = vmatpush.bf16.msrb.mxu0 %v1952_v33 }
  0xeb   : > { %v793_v18 = vunpack.c.l.bf16 %v776_v7  ;;  %v641_v20 = vunpack.c.l.bf16 %v624_v51  ;;  %v841_v28 = vunpack.c.l.bf16 %v824_v4  ;;  %v2488_v30 = vshrl.u32 %v470_v34, 7 }
  0xec   : > { %v865_v31 = vpack.c.bf16 %v2033_v48, %v2033_v48  ;;  %v2496_v5 = vpop.eup %2036  ;;  %v808_v32 = vmul.f32 0.796875, %v791_v13  ;;  %v881_v6 = vunpack.c.l.bf16 %v864_v25  ;;  %v897_v39 = vadd.f32 1.0, %v880_v26 }
  0xed   : > { %v658_v35 = vmul.f32 %v641_v20, %v2472_v56  ;;  %2044 = vtanh.f32 %v840_v55  ;;  %v2499_v36 = vmul.f32 0.796875, %v792_v10  ;;  %v866_v40 = vpack.c.bf16 %v2035_v17, %v2035_v17  ;;  %1454 = vmatpush.bf16.msrb.mxu3 %v1943_v52  ;;  %v1942_v17 = vld [vmem:[%s2776_s3 + $0x48] sm:$0xff] }
  0xee   : > { %v882_v47 = vunpack.c.l.bf16 %v865_v31  ;;  %v2501_v43 = vpop.eup %2038  ;;  %v2503_v46 = vmul.f32 0.796875, %v793_v18  ;;  %v898_v19 = vadd.f32 1.0, %v881_v6  ;;  %v914_v48 = vpack.c.bf16 %v897_v39, %v897_v39  ;;  %1503 = vmatpush.bf16.msrb.mxu0 %v1951_v57  ;;  %v1950_v18 = vld [vmem:[%s2776_s3 + $0x88] sm:$0xff] }
  0xef   : > { %v675_v14 = vpack.c.bf16 %v658_v35, %v658_v35  ;;  %v2505_v50 = vpop.eup %2040  ;;  %2046 = vtanh.f32 %v841_v28  ;;  %vm506_vm1 = vcmp.ge.s32.totalorder %v2488_v30, 2  ;;  %v883_v58 = vunpack.c.l.bf16 %v866_v40 }
  0xf0   : > { %v899_v60 = vadd.f32 1.0, %v882_v47  ;;  %v825_v61 = vpack.c.bf16 %v808_v32, %v808_v32  ;;  %v915_v0 = vpack.c.bf16 %v898_v19, %v898_v19  ;;  %v931_v1 = vunpack.c.l.bf16 %v914_v48  ;;  %v2514_v4 = vpop.eup %2042  ;;  %vm2549_vm2 = vmpackc.low %vm506_vm1, %vm506_vm1 }
  0xf1   : > { %v692_v62 = vunpack.c.l.bf16 %v675_v14  ;;  %v826_v11 = vpack.c.bf16 %v2499_v36, %v2499_v36  ;;  %v900_v34 = vadd.f32 1.0, %v883_v58  ;;  %v867_v7 = vpack.c.bf16 %v2385_v44, %v2385_v44  ;;  %1455 = vmatpush.bf16.msrb.mxu3 %v1942_v17  ;;  %v1949_v58 = vld [vmem:[%s2776_s3 + $0x80] sm:$0xff] }
  0xf2   : > { %v916_v59 = vpack.c.bf16 %v899_v60, %v899_v60  ;;  %v827_v51 = vpack.c.bf16 %v2503_v46, %v2503_v46  ;;  %v932_v55 = vunpack.c.l.bf16 %v915_v0  ;;  %v948_v10 = vmul.f32 0.5, %v931_v1  ;;  %1504 = vmatpush.bf16.msrb.mxu0 %v1950_v18 }
  0xf3   : > { %v709_v8 = vmul.f32 0.044677734, %v692_v62  ;;  %v2522_v13 = vpop.eup %2044  ;;  %v917_v20 = vpack.c.bf16 %v900_v34, %v900_v34  ;;  %v868_v44 = vpack.c.bf16 %v2422_v24, %v2422_v24  ;;  %v884_v26 = vunpack.c.l.bf16 %v867_v7  ;;  %v1941_v24 = vld [vmem:[%s2776_s3 + $0x40] sm:$0xff] }
  0xf4   : > { %v933_v25 = vunpack.c.l.bf16 %v916_v59  ;;  %v842_v28 = vunpack.c.l.bf16 %v825_v61  ;;  %v949_v33 = vmul.f32 0.5, %v932_v55  ;;  %v965_v31 = vpack.c.bf16 %v948_v10, %v948_v10 }
  0xf5   : > { %v726_v3 = vpack.c.bf16 %v709_v8, %v709_v8  ;;  %v2532_v32 = vpop.eup %2046  ;;  %v934_v35 = vunpack.c.l.bf16 %v917_v20  ;;  %v885_v39 = vunpack.c.l.bf16 %v868_v44  ;;  %v901_v40 = vadd.f32 1.0, %v884_v26  ;;  %1456 = vmatpush.bf16.msrb.mxu3 %v1941_v24 }
  0xf6   : > { %v950_v6 = vmul.f32 0.5, %v933_v25  ;;  %v966_v14 = vpack.c.bf16 %v949_v33, %v949_v33  ;;  %v982_v19 = vunpack.c.l.bf16 %v965_v31  ;;  %v869_v48 = vpack.c.bf16 %v2501_v43, %v2501_v43  ;;  %1505 = vmatpush.bf16.msrb.mxu0 %v1949_v58 }
  0xf7   : > { %v743_v47 = vunpack.c.l.bf16 %v726_v3  ;;  %v951_v52 = vmul.f32 0.5, %v934_v35  ;;  %v902_v60 = vadd.f32 1.0, %v885_v39  ;;  %v918_v61 = vpack.c.bf16 %v901_v40, %v901_v40 }
  0xf8   : > { %v967_v57 = vpack.c.bf16 %v950_v6, %v950_v6  ;;  %2048 = vtanh.f32 %v842_v28  ;;  %v983_v0 = vunpack.c.l.bf16 %v966_v14  ;;  %v999_v1 = vmul.f32 %v982_v19, %v2277_v21  ;;  %1814 = vmatmul.msk.bf16.gmra.mxu1 %vm315_vm0, %v2256_v9 }
  0xf9   : > { %v760_v62 = vadd.f32 %v743_v47, %v2472_v56  ;;  %v968_v34 = vpack.c.bf16 %v951_v52, %v951_v52  ;;  %v919_v7 = vpack.c.bf16 %v902_v60, %v902_v60  ;;  %v935_v8 = vunpack.c.l.bf16 %v918_v61 }
  0xfa   : > { %v984_v59 = vunpack.c.l.bf16 %v967_v57  ;;  %v1000_v10 = vmul.f32 %v983_v0, %v2292_v41  ;;  %v1016_v21 = vpack.c.bf16 %v999_v1, %v999_v1  ;;  %v870_v9 = vpack.c.bf16 %v2514_v4, %v2514_v4 }
  0xfb   : > { %v777_v55 = vpack.c.bf16 %v760_v62, %v760_v62  ;;  %v985_v17 = vunpack.c.l.bf16 %v968_v34  ;;  %v936_v20 = vunpack.c.l.bf16 %v919_v7  ;;  %v886_v25 = vunpack.c.l.bf16 %v869_v48 }
  0xfc   : > { %v1001_v18 = vmul.f32 %v984_v59, %v2312_v15  ;;  %v1017_v26 = vpack.c.bf16 %v1000_v10, %v1000_v10  ;;  %v1084_v28 = vsel %vm2549_vm2, %v1016_v21, 0  ;;  %v952_v3 = vmul.f32 0.5, %v935_v8 }
  0xfd   : > { %v794_v44 = vunpack.c.l.bf16 %v777_v55  ;;  %v1117_v41 = vunpack.c.l.b16 %v1084_v28  ;;  %v1002_v31 = vmul.f32 %v985_v17, %v2352_v63  ;;  %v953_v35 = vmul.f32 0.5, %v936_v20 }
  0xfe   : > { %v1018_v4 = vpack.c.bf16 %v1001_v18, %v1001_v18  ;;  %v2564_v15 = vpop.eup %2048  ;;  %v1085_v39 = vsel %vm2559_vm4, %v1017_v26, 0  ;;  %v969_v40 = vpack.c.bf16 %v952_v3, %v952_v3  ;;  %v887_v47 = vunpack.c.l.bf16 %v870_v9 }
  0xff   : > { %v811_v6 = vmul.f32 0.796875, %v794_v44  ;;  %v1118_v14 = vunpack.c.l.b16 %v1085_v39  ;;  %v1019_v19 = vpack.c.bf16 %v1002_v31, %v1002_v31  ;;  %v970_v24 = vpack.c.bf16 %v953_v35, %v953_v35  ;;  %v2056_v35 = vld [vmem:[%s2241_s15 + $0x10] sm:$0xff] }
 0x100   : > { %v1086_v48 = vsel %vm2559_vm4, %v1018_v4, 0  ;;  %v986_v63 = vunpack.c.l.bf16 %v969_v40  ;;  %v903_v58 = vadd.f32 1.0, %v886_v25  ;;  %v904_v0 = vadd.f32 1.0, %v887_v47 }
 0x101   : > { %v828_v52 = vpack.c.bf16 %v811_v6, %v811_v6  ;;  %v1119_v57 = vunpack.c.l.b16 %v1086_v48  ;;  %v1133_v60 = vpack.c.b16 %v1118_v14, %v1117_v41  ;;  %v1087_v61 = vsel %vm2559_vm4, %v1019_v19, 0 }
 0x102   : > { %v987_v62 = vunpack.c.l.bf16 %v970_v24  ;;  %v1120_v43 = vunpack.c.l.b16 %v1087_v61  ;;  %v1003_v34 = vmul.f32 %v986_v63, %v2279_v22  ;;  %v920_v59 = vpack.c.bf16 %v903_v58, %v903_v58 }
 0x103   : > { %v845_v1 = vunpack.c.l.bf16 %v828_v52  ;;  %1408 = vmatmul.bf16.vlgmr.msrb.gmra.mxu2 %v1133_v60  ;;  %v1153_v7 = vrot.slane %v1133_v60, 1  ;;  %v921_v55 = vpack.c.bf16 %v904_v0, %v904_v0  ;;  %v871_v20 = vpack.c.bf16 %v2397_v54, %v2397_v54 }
 0x104   : > { %v1004_v8 = vmul.f32 %v987_v62, %v2294_v42  ;;  %v2574_v10 = vpack.c.b16 %v1120_v43, %v1119_v57  ;;  %v1020_v21 = vpack.c.bf16 %v1003_v34, %v1003_v34  ;;  %v937_v9 = vunpack.c.l.bf16 %v920_v59 }
 0x105   : > { %2050 = vtanh.f32 %v845_v1  ;;  %v938_v18 = vunpack.c.l.bf16 %v921_v55  ;;  %v872_v22 = vpack.c.bf16 %v2496_v5, %v2496_v5  ;;  %v1179_v44 = vrot.slane %v1133_v60, 2 }
 0x106   : > { %v1021_v17 = vpack.c.bf16 %v1004_v8, %v1004_v8  ;;  %v1154_v25 = vrot.slane %v2574_v10, 1  ;;  %v1180_v42 = vrot.slane %v2574_v10, 2  ;;  %v954_v26 = vmul.f32 0.5, %v937_v9 }
 0x107   : > { %v1088_v28 = vsel %vm2559_vm4, %v1020_v21, 0  ;;  %v955_v41 = vmul.f32 0.5, %v938_v18  ;;  %v888_v31 = vunpack.c.l.bf16 %v871_v20  ;;  %v889_v40 = vunpack.c.l.bf16 %v872_v22 }
 0x108   : > { %v1089_v3 = vsel %vm2559_vm4, %v1021_v17, 0  ;;  %v1155_v54 = vsel %vm1152_vm5, %v1153_v7, %v1154_v25  ;;  %v1181_v5 = vsel %vm1178_vm6, %v1179_v44, %v1180_v42  ;;  %1815 = vmatmul.msk.bf16.gmra.mxu1 %vm315_vm0, %v2056_v35  ;;  %v971_v6 = vpack.c.bf16 %v954_v26, %v954_v26 }
 0x109   : > { %v1122_v4 = vunpack.c.l.b16 %v1089_v3  ;;  %1457 = vmatmul.bf16.vlgmr.msrb.gmra.mxu3 %v1155_v54  ;;  %1506 = vmatmul.bf16.vlgmr.msrb.gmra.mxu0 %v1181_v5  ;;  %v972_v39 = vpack.c.bf16 %v955_v41, %v955_v41  ;;  %v905_v47 = vadd.f32 1.0, %v888_v31  ;;  %v873_v14 = vpack.c.bf16 %v2505_v50, %v2505_v50 }
 0x10a   : > { %v843_v48 = vunpack.c.l.bf16 %v826_v11  ;;  %v1121_v24 = vunpack.c.l.b16 %v1088_v28  ;;  %v988_v52 = vunpack.c.l.bf16 %v971_v6  ;;  %v874_v57 = vpack.c.bf16 %v2522_v13, %v2522_v13 }
 0x10b   : > { %v2051_v19 = vpop.eup %2050  ;;  %v989_v58 = vunpack.c.l.bf16 %v972_v39  ;;  %v906_v60 = vadd.f32 1.0, %v889_v40  ;;  %v922_v61 = vpack.c.bf16 %v905_v47, %v905_v47  ;;  %v844_v62 = vunpack.c.l.bf16 %v827_v51 }
 0x10c   : > { %v879_v63 = vpack.c.bf16 %v2051_v19, %v2051_v19  ;;  %v890_v0 = vunpack.c.l.bf16 %v873_v14  ;;  %v2604_v1 = vpack.c.b16 %v1122_v4, %v1121_v24  ;;  %2052 = vtanh.f32 %v843_v48 }
 0x10d   : > { %v923_v43 = vpack.c.bf16 %v906_v60, %v906_v60  ;;  %v939_v36 = vunpack.c.l.bf16 %v922_v61  ;;  %v1005_v11 = vmul.f32 %v988_v52, %v2314_v16  ;;  %v891_v34 = vunpack.c.l.bf16 %v874_v57 }
 0x10e   : > { %v896_v50 = vunpack.c.l.bf16 %v879_v63  ;;  %v875_v13 = vpack.c.bf16 %v2532_v32, %v2532_v32  ;;  %v1006_v7 = vmul.f32 %v989_v58, %v2369_v29  ;;  %2054 = vtanh.f32 %v844_v62  ;;  %v2057_v58 = vld [vmem:[%s2241_s15 + $0x18] sm:$0xff] }
 0x10f   : > { %v940_v8 = vunpack.c.l.bf16 %v923_v43  ;;  %v956_v55 = vmul.f32 0.5, %v939_v36  ;;  %v907_v46 = vadd.f32 1.0, %v890_v0  ;;  %v908_v51 = vadd.f32 1.0, %v891_v34 }
 0x110   : > { %v913_v59 = vadd.f32 1.0, %v896_v50  ;;  %v876_v21 = vpack.c.bf16 %v2564_v15, %v2564_v15  ;;  %v1156_v17 = vrot.slane %v2604_v1, 1  ;;  %v1182_v16 = vrot.slane %v2604_v1, 2 }
 0x111   : > { %v957_v18 = vmul.f32 0.5, %v940_v8  ;;  %v1022_v20 = vpack.c.bf16 %v1005_v11, %v1005_v11  ;;  %v973_v22 = vpack.c.bf16 %v956_v55, %v956_v55  ;;  %v924_v32 = vpack.c.bf16 %v907_v46, %v907_v46 }
 0x112   : > { %v930_v9 = vpack.c.bf16 %v913_v59, %v913_v59  ;;  %v925_v44 = vpack.c.bf16 %v908_v51, %v908_v51  ;;  %v1023_v29 = vpack.c.bf16 %v1006_v7, %v1006_v7  ;;  %v892_v28 = vunpack.c.l.bf16 %v875_v13  ;;  %v2053_v41 = vpop.eup %2052 }
 0x113   : > { %1413 = vmatmul.bf16.gmra.mxu2 %v2574_v10  ;;  %v974_v26 = vpack.c.bf16 %v957_v18, %v957_v18  ;;  %v893_v3 = vunpack.c.l.bf16 %v876_v21  ;;  %v990_v54 = vunpack.c.l.bf16 %v973_v22  ;;  %v941_v15 = vunpack.c.l.bf16 %v924_v32 }
 0x114   : > { %v947_v31 = vunpack.c.l.bf16 %v930_v9  ;;  %v942_v5 = vunpack.c.l.bf16 %v925_v44  ;;  %v909_v35 = vadd.f32 1.0, %v892_v28  ;;  %v2055_v39 = vpop.eup %2054  ;;  %v1157_v40 = vsel %vm1152_vm5, %v1154_v25, %v1156_v17 }
 0x115   : > { %v991_v4 = vunpack.c.l.bf16 %v974_v26  ;;  %v910_v6 = vadd.f32 1.0, %v893_v3  ;;  %v1183_v47 = vsel %vm1178_vm6, %v1180_v42, %v1182_v16  ;;  %v1007_v14 = vmul.f32 %v990_v54, %v2288_v38 }
 0x116   : > { %v958_v19 = vmul.f32 0.5, %v941_v15  ;;  %v1090_v48 = vsel %vm2559_vm4, %v1022_v20, 0  ;;  %v959_v52 = vmul.f32 0.5, %v942_v5  ;;  %v926_v57 = vpack.c.bf16 %v909_v35, %v909_v35 }
 0x117   : > { %v1008_v24 = vmul.f32 %v991_v4, %v2306_v2  ;;  %v964_v63 = vmul.f32 0.5, %v947_v31  ;;  %v1091_v25 = vsel %vm2559_vm4, %v1023_v29, 0  ;;  %v1024_v10 = vpack.c.bf16 %v1007_v14, %v1007_v14 }
 0x118   : > { %1816 = vmatmul.msk.bf16.gmra.mxu1 %vm315_vm0, %v2057_v58  ;;  %v975_v60 = vpack.c.bf16 %v958_v19, %v958_v19  ;;  %v976_v42 = vpack.c.bf16 %v959_v52, %v959_v52  ;;  %v927_v61 = vpack.c.bf16 %v910_v6, %v910_v6  ;;  %v943_v0 = vunpack.c.l.bf16 %v926_v57 }
 0x119   : > { %1462 = vmatmul.bf16.gmra.mxu3 %v1157_v40  ;;  %1511 = vmatmul.bf16.gmra.mxu0 %v1183_v47  ;;  %v1025_v38 = vpack.c.bf16 %v1008_v24, %v1008_v24  ;;  %v877_v50 = vpack.c.bf16 %v2053_v41, %v2053_v41  ;;  %v1123_v2 = vunpack.c.l.b16 %v1090_v48  ;;  %v1124_v43 = vunpack.c.l.b16 %v1091_v25 }
 0x11a   : > { %v992_v62 = vunpack.c.l.bf16 %v975_v60  ;;  %v993_v11 = vunpack.c.l.bf16 %v976_v42  ;;  %v981_v34 = vpack.c.bf16 %v964_v63, %v964_v63  ;;  %v944_v59 = vunpack.c.l.bf16 %v927_v61  ;;  %v2058_v42 = vld [vmem:[%s2241_s15 + $0x20] sm:$0xff] }
 0x11b   : > { %v1093_v36 = vsel %vm2559_vm4, %v1025_v38, 0  ;;  %v960_v7 = vmul.f32 0.5, %v943_v0  ;;  %v1092_v8 = vsel %vm2559_vm4, %v1024_v10, 0  ;;  %v878_v46 = vpack.c.bf16 %v2055_v39, %v2055_v39 }
 0x11c   : > { %v1009_v13 = vmul.f32 %v992_v62, %v2346_v49  ;;  %v1010_v55 = vmul.f32 %v993_v11, %v2377_v37  ;;  %v894_v51 = vunpack.c.l.bf16 %v877_v50  ;;  %v1126_v21 = vunpack.c.l.b16 %v1093_v36 }
 0x11d   : > { %v961_v18 = vmul.f32 0.5, %v944_v59  ;;  %v977_v20 = vpack.c.bf16 %v960_v7, %v960_v7  ;;  %v2639_v22 = vpack.c.b16 %v1124_v43, %v1123_v2  ;;  %v895_v44 = vunpack.c.l.bf16 %v878_v46 }
 0x11e   : > { %v1026_v9 = vpack.c.bf16 %v1009_v13, %v1009_v13  ;;  %v1027_v32 = vpack.c.bf16 %v1010_v55, %v1010_v55  ;;  %v911_v29 = vadd.f32 1.0, %v894_v51  ;;  %v1125_v26 = vunpack.c.l.b16 %v1092_v8 }
 0x11f   : > { %v978_v28 = vpack.c.bf16 %v961_v18, %v961_v18  ;;  %v998_v3 = vunpack.c.l.bf16 %v981_v34  ;;  %v994_v41 = vunpack.c.l.bf16 %v977_v20  ;;  %v912_v31 = vadd.f32 1.0, %v895_v44 }
 0x120   : > { %v1094_v49 = vsel %vm2559_vm4, %v1026_v9, 0  ;;  %v1095_v37 = vsel %vm2559_vm4, %v1027_v32, 0  ;;  %v2645_v54 = vpack.c.b16 %v1126_v21, %v1125_v26  ;;  %v1158_v35 = vrot.slane %v2639_v22, 1 }
 0x121   : > { %v1127_v15 = vunpack.c.l.b16 %v1094_v49  ;;  %v1128_v5 = vunpack.c.l.b16 %v1095_v37  ;;  %v995_v4 = vunpack.c.l.bf16 %v978_v28  ;;  %v1011_v6 = vmul.f32 %v994_v41, %v2388_v23 }
 0x122   : > { %v928_v39 = vpack.c.bf16 %v911_v29, %v911_v29  ;;  %v929_v40 = vpack.c.bf16 %v912_v31, %v912_v31  ;;  %v1184_v47 = vrot.slane %v2639_v22, 2  ;;  %v1015_v48 = vmul.f32 %v998_v3, %v2472_v56  ;;  %v2059_v3 = vld [vmem:[%s2241_s15 + $0x28] sm:$0xff] }
 0x123   : > { %1418 = vmatmul.bf16.gmra.mxu2 %v2604_v1  ;;  %v2651_v14 = vpack.c.b16 %v1128_v5, %v1127_v15  ;;  %v1012_v19 = vmul.f32 %v995_v4, %v2436_v45  ;;  %v1028_v24 = vpack.c.bf16 %v1011_v6, %v1011_v6  ;;  %v1160_v63 = vrot.slane %v2645_v54, 1  ;;  %v2060_v5 = vld [vmem:[%s2241_s15 + $0x30] sm:$0xff] }
 0x124   : > { %v945_v52 = vunpack.c.l.bf16 %v928_v39  ;;  %v946_v57 = vunpack.c.l.bf16 %v929_v40  ;;  %v487_v23 = vadd.s32 128, %v2488_v30  ;;  %v1159_v10 = vsel %vm1152_vm5, %v1156_v17, %v1158_v35 }
 0x125   : > { %v1162_v25 = vrot.slane %v2651_v14, 1  ;;  %v1029_v58 = vpack.c.bf16 %v1012_v19, %v1012_v19  ;;  %v1096_v60 = vsel %vm2559_vm4, %v1028_v24, 0  ;;  %v1185_v56 = vsel %vm1178_vm6, %v1182_v16, %v1184_v47 }
 0x126   : > { %v962_v45 = vmul.f32 0.5, %v945_v52  ;;  %v963_v38 = vmul.f32 0.5, %v946_v57  ;;  %v1129_v62 = vunpack.c.l.b16 %v1096_v60  ;;  %vm539_vm7 = vcmp.lt.s32.totalorder %v487_v23, 130 }
 0x127   : > { %v1163_v61 = vsel %vm1152_vm5, %v1160_v63, %v1162_v25  ;;  %v1097_v30 = vsel %vm2559_vm4, %v1029_v58, 0  ;;  %v1032_v2 = vpack.c.bf16 %v1015_v48, %v1015_v48  ;;  %vm1083_vm8 = vmpackc.low %vm539_vm7, %vm539_vm7  ;;  %v1186_v44 = vrot.slane %v2645_v54, 2  ;;  %v2702_v48 = vld [vmem:[%s2777_s4] ss:$0 sm:$0xff] }
 0x128   : > { %1817 = vmatmul.msk.bf16.gmra.mxu1 %vm315_vm0, %v2058_v42  ;;  %v1130_v17 = vunpack.c.l.b16 %v1097_v30  ;;  %v979_v0 = vpack.c.bf16 %v962_v45, %v962_v45  ;;  %v980_v50 = vpack.c.bf16 %v963_v38, %v963_v38  ;;  %v1161_v49 = vsel %vm1152_vm5, %v1158_v35, %v1160_v63  ;;  %v2061_v35 = vld [vmem:[%s2241_s15 + $0x38] sm:$0xff]  ;;  %s2082_s15 = scalar_lea.hbm %s2778_s5, 64 }
 0x129   : > { %1467 = vmatmul.bf16.gmra.mxu3 %v1159_v10  ;;  %1516 = vmatmul.bf16.gmra.mxu0 %v1185_v56  ;;  %v1100_v36 = vsel %vm1083_vm8, %v1032_v2, 0  ;;  %v1187_v28 = vsel %vm1178_vm6, %v1184_v47, %v1186_v44  ;;  %v1188_v31 = vrot.slane %v2651_v14, 2  ;;  %p2084_p2 = scmp.lt.s32.totalorder %s2082_s15, %s2078_s11 }
 0x12a   : > { %v1139_v1 = vpack.c.b16 %v1130_v17, %v1129_v62  ;;  %v996_v43 = vunpack.c.l.bf16 %v979_v0  ;;  %v997_v16 = vunpack.c.l.bf16 %v980_v50  ;;  %v1150_v59 = vunpack.c.l.b16 %v1100_v36 }
 0x12b   : > { %v1189_v15 = vsel %vm1178_vm6, %v1186_v44, %v1188_v31  ;;  %p2085_p3 = por %p2084_p2, %p2083_p1 }
 0x12c   : > { %v1164_v11 = vrot.slane %v1139_v1, 1  ;;  %v1013_v34 = vmul.f32 %v996_v43, %v2424_v27  ;;  %v1014_v13 = vmul.f32 %v997_v16, %v2442_v53  ;;  %v1151_v46 = vpack.c.b16 %v1150_v59, %v1150_v59 }
 0x12d   : > { %v1190_v27 = vrot.slane %v1139_v1, 2  ;;  %p2086_p5 = pnand %p2085_p3, %p2081_p0 }
 0x12e   : > { %v1165_v7 = vsel %vm1152_vm5, %v1162_v25, %v1164_v11  ;;  %v1030_v8 = vpack.c.bf16 %v1013_v34, %v1013_v34  ;;  %v1031_v55 = vpack.c.bf16 %v1014_v13, %v1014_v13  ;;  %v1168_v53 = vrot.slane %v1151_v46, 1 }
 0x12f   : > { %v1194_v32 = vrot.slane %v1151_v46, 2  ;;  %v1191_v4 = vsel %vm1178_vm6, %v1188_v31, %v1190_v27 }
 0x130   : > { %v1098_v51 = vsel %vm2559_vm4, %v1030_v8, 0  ;;  %v1099_v21 = vsel %vm2559_vm4, %v1031_v55, 0 }
 0x131   : > { %v1131_v9 = vunpack.c.l.b16 %v1098_v51  ;;  %v1132_v18 = vunpack.c.l.b16 %v1099_v21 }
 0x133   : > { %1423 = vmatmul.bf16.gmra.mxu2 %v2639_v22  ;;  %v1140_v20 = vpack.c.b16 %v1132_v18, %v1131_v9 }
 0x135   : > { %v1166_v29 = vrot.slane %v1140_v20, 1  ;;  %v1192_v26 = vrot.slane %v1140_v20, 2 }
 0x137   : > { %v1167_v33 = vsel %vm1152_vm5, %v1164_v11, %v1166_v29  ;;  %v1193_v22 = vsel %vm1178_vm6, %v1190_v27, %v1192_v26  ;;  %v1169_v37 = vsel %vm1152_vm5, %v1166_v29, %v1168_v53  ;;  %v1195_v41 = vsel %vm1178_vm6, %v1192_v26, %v1194_v32 }
 0x138   : > { %1818 = vmatmul.msk.bf16.gmra.mxu1 %vm315_vm0, %v2059_v3 }
 0x139   : > { %1472 = vmatmul.bf16.gmra.mxu3 %v1161_v49  ;;  %1521 = vmatmul.bf16.gmra.mxu0 %v1187_v28 }
 0x143   : > { %1428 = vmatmul.bf16.gmra.mxu2 %v2645_v54 }
 0x148   : > { %1819 = vmatmul.msk.bf16.gmra.mxu1 %vm315_vm0, %v2060_v5 }
 0x149   : > { %1477 = vmatmul.bf16.gmra.mxu3 %v1163_v61  ;;  %1526 = vmatmul.bf16.gmra.mxu0 %v1189_v15 }
 0x153   : > { %1433 = vmatmul.bf16.gmra.mxu2 %v2651_v14 }
 0x158   : > { %1820 = vmatmul.msk.bf16.gmra.mxu1 %vm315_vm0, %v2061_v35 }
 0x159   : > { %1482 = vmatmul.bf16.gmra.mxu3 %v1165_v7  ;;  %1531 = vmatmul.bf16.gmra.mxu0 %v1191_v4 }
 0x163   : > { %1438 = vmatmul.bf16.gmra.mxu2 %v1139_v1 }
 0x165   : > { %v405_v54 = vpop.f32.mrf.mxu1 }
 0x166   : > { %v1565_v52 = vrot.slane %v405_v54, 2 }
 0x168   : > { %1821 = vmatmul.msk.bf16.gmra.mxu1 %vm315_vm0, %v2260_v12 }
 0x169   : > { %1487 = vmatmul.bf16.gmra.mxu3 %v1167_v33  ;;  %1536 = vmatmul.bf16.gmra.mxu0 %v1193_v22 }
 0x16d   : > { %v407_v6 = vpop.f32.mrf.mxu1 }
 0x16e   : > { %v1566_v12 = vrot.slane %v407_v6, 2 }
 0x170   : > { %v1567_v60 = vsel %vm1178_vm6, %v1565_v52, %v1566_v12 }
 0x173   : > { %1443 = vmatmul.bf16.gmra.mxu2 %v1140_v20 }
 0x175   : > { %v410_v39 = vpop.f32.mrf.mxu1 }
 0x176   : > { %v1568_v56 = vrot.slane %v410_v39, 2 }
 0x178   : > { %v1569_v50 = vsel %vm1178_vm6, %v1566_v12, %v1568_v56 }
 0x179   : > { %1492 = vmatmul.bf16.gmra.mxu3 %v1169_v37  ;;  %1541 = vmatmul.bf16.gmra.mxu0 %v1195_v41 }
 0x17d   : > { %v412_v40 = vpop.f32.mrf.mxu1 }
 0x17e   : > { %v1570_v43 = vrot.slane %v412_v40, 2 }
 0x180   : > { %v1571_v7 = vsel %vm1178_vm6, %v1568_v56, %v1570_v43 }
 0x185   : > { %v415_v47 = vpop.f32.mrf.mxu1 }
 0x186   : > { %v1409_v14 = vpop.f32.mrf.mxu2  ;;  %v1507_v19 = vpop.f32.mrf.mxu0  ;;  %v1572_v46 = vrot.slane %v415_v47, 2 }
 0x187   : > { %v1410_v24 = vadd.f32 %v2702_v48, %v1409_v14 }
 0x188   : > { %v1573_v53 = vsel %vm1178_vm6, %v1570_v43, %v1572_v46 }
 0x18c   : > { %v1458_v57 = vpop.f32.mrf.mxu3 }
 0x18d   : > { %v1459_v63 = vadd.f32 %v1458_v57, %v1410_v24  ;;  %v417_v25 = vpop.f32.mrf.mxu1 }
 0x18e   : > { %v1411_v58 = vpop.f32.mrf.mxu2  ;;  %v1509_v23 = vpop.f32.mrf.mxu0  ;;  %v1574_v29 = vrot.slane %v417_v25, 2 }
 0x18f   : > { %v1508_v10 = vadd.f32 %v1507_v19, %v1459_v63  ;;  %v1412_v38 = vadd.f32 %v2702_v48, %v1411_v58 }
 0x190   : > { %v1575_v37 = vsel %vm1178_vm6, %v1572_v46, %v1574_v29 }
 0x191   : > { %v1614_v45 = vadd.f32 %v1567_v60, %v1508_v10 }
 0x193   : > { %1630 = vxpose.xlu0.b32.start [1/16] (narrow) %v1614_v45, 32 }
 0x194   : > { %v1460_v42 = vpop.f32.mrf.mxu3 }
 0x195   : > { %v1461_v61 = vadd.f32 %v1460_v42, %v1412_v38  ;;  %v420_v30 = vpop.f32.mrf.mxu1 }
 0x196   : > { %v1414_v62 = vpop.f32.mrf.mxu2  ;;  %v1512_v17 = vpop.f32.mrf.mxu0  ;;  %v1576_v15 = vrot.slane %v420_v30, 2 }
 0x197   : > { %v1510_v0 = vadd.f32 %v1509_v23, %v1461_v61  ;;  %v1415_v1 = vadd.f32 %v2702_v48, %v1414_v62 }
 0x198   : > { %v1577_v40 = vsel %vm1178_vm6, %v1574_v29, %v1576_v15 }
 0x199   : > { %v1615_v2 = vadd.f32 %v1569_v50, %v1510_v0 }
 0x19b   : > { %1631 = vxpose.xlu0.b32.cont [2/16] (narrow) %v1615_v2, 32 }
 0x19c   : > { %v1463_v16 = vpop.f32.mrf.mxu3 }
 0x19d   : > { %v1464_v36 = vadd.f32 %v1463_v16, %v1415_v1  ;;  %v422_v11 = vpop.f32.mrf.mxu1 }
 0x19e   : > { %v1416_v34 = vpop.f32.mrf.mxu2  ;;  %v1514_v13 = vpop.f32.mrf.mxu0  ;;  %v1578_v19 = vrot.slane %v422_v11, 2 }
 0x19f   : > { %v1513_v59 = vadd.f32 %v1512_v17, %v1464_v36  ;;  %v1417_v55 = vadd.f32 %v2702_v48, %v1416_v34 }
 0x1a0   : > { %v1579_v58 = vsel %vm1178_vm6, %v1576_v15, %v1578_v19 }
 0x1a1   : > { %v1616_v8 = vadd.f32 %v1571_v7, %v1513_v59 }
 0x1a3   : > { %1632 = vxpose.xlu0.b32.cont [3/16] (narrow) %v1616_v8, 32 }
 0x1a4   : > { %v1465_v51 = vpop.f32.mrf.mxu3 }
 0x1a5   : > { %v1466_v21 = vadd.f32 %v1465_v51, %v1417_v55  ;;  %v425_v9 = vpop.f32.mrf.mxu1 }
 0x1a6   : > { %v1419_v18 = vpop.f32.mrf.mxu2  ;;  %v1517_v27 = vpop.f32.mrf.mxu0  ;;  %v1580_v60 = vrot.slane %v425_v9, 2 }
 0x1a7   : > { %v1515_v20 = vadd.f32 %v1514_v13, %v1466_v21  ;;  %v1420_v44 = vadd.f32 %v2702_v48, %v1419_v18 }
 0x1a8   : > { %v1581_v62 = vsel %vm1178_vm6, %v1578_v19, %v1580_v60 }
 0x1a9   : > { %v1617_v32 = vadd.f32 %v1573_v53, %v1515_v20 }
 0x1ab   : > { %1633 = vxpose.xlu0.b32.cont [4/16] (narrow) %v1617_v32, 32 }
 0x1ac   : > { %v1468_v26 = vpop.f32.mrf.mxu3 }
 0x1ad   : > { %v1469_v49 = vadd.f32 %v1468_v26, %v1420_v44  ;;  %v427_v28 = vpop.f32.mrf.mxu1 }
 0x1ae   : > { %v1421_v3 = vpop.f32.mrf.mxu2  ;;  %v1519_v33 = vpop.f32.mrf.mxu0  ;;  %v1582_v50 = vrot.slane %v427_v28, 2 }
 0x1af   : > { %v1518_v22 = vadd.f32 %v1517_v27, %v1469_v49  ;;  %v1422_v31 = vadd.f32 %v2702_v48, %v1421_v3 }
 0x1b0   : > { %v1583_v34 = vsel %vm1178_vm6, %v1580_v60, %v1582_v50 }
 0x1b1   : > { %v1618_v41 = vadd.f32 %v1575_v37, %v1518_v22 }
 0x1b3   : > { %1634 = vxpose.xlu0.b32.cont [5/16] (narrow) %v1618_v41, 32 }
 0x1b4   : > { %v1470_v5 = vpop.f32.mrf.mxu3 }
 0x1b5   : > { %v1471_v4 = vadd.f32 %v1470_v5, %v1422_v31  ;;  %v430_v35 = vpop.f32.mrf.mxu1 }
 0x1b6   : > { %v1424_v54 = vpop.f32.mrf.mxu2  ;;  %v1522_v6 = vpop.f32.mrf.mxu0  ;;  %v1584_v7 = vrot.slane %v430_v35, 2 }
 0x1b7   : > { %v1520_v39 = vadd.f32 %v1519_v33, %v1471_v4  ;;  %v1425_v14 = vadd.f32 %v2702_v48, %v1424_v54 }
 0x1b8   : > { %v1585_v18 = vsel %vm1178_vm6, %v1582_v50, %v1584_v7 }
 0x1b9   : > { %v1619_v47 = vadd.f32 %v1577_v40, %v1520_v39 }
 0x1bb   : > { %1635 = vxpose.xlu0.b32.cont [6/16] (narrow) %v1619_v47, 32 }
 0x1bc   : > { %v1473_v24 = vpop.f32.mrf.mxu3 }
 0x1bd   : > { %v1474_v52 = vadd.f32 %v1473_v24, %v1425_v14  ;;  %v432_v12 = vpop.f32.mrf.mxu1 }
 0x1be   : > { %v1426_v57 = vpop.f32.mrf.mxu2  ;;  %v1524_v63 = vpop.f32.mrf.mxu0  ;;  %v1586_v53 = vrot.slane %v432_v12, 2 }
 0x1bf   : > { %v1523_v25 = vadd.f32 %v1522_v6, %v1474_v52  ;;  %v1427_v10 = vadd.f32 %v2702_v48, %v1426_v57 }
 0x1c0   : > { %v1587_v3 = vsel %vm1178_vm6, %v1584_v7, %v1586_v53 }
 0x1c1   : > { %v1620_v23 = vadd.f32 %v1579_v58, %v1523_v25 }
 0x1c3   : > { %1636 = vxpose.xlu0.b32.cont [7/16] (narrow) %v1620_v23, 32 }
 0x1c4   : > { %v1475_v45 = vpop.f32.mrf.mxu3 }
 0x1c5   : > { %v1476_v38 = vadd.f32 %v1475_v45, %v1427_v10  ;;  %v435_v56 = vpop.f32.mrf.mxu1 }
 0x1c6   : > { %v1429_v42 = vpop.f32.mrf.mxu2  ;;  %v1527_v61 = vpop.f32.mrf.mxu0  ;;  %v1588_v37 = vrot.slane %v435_v56, 2 }
 0x1c7   : > { %v1525_v30 = vadd.f32 %v1524_v63, %v1476_v38  ;;  %v1430_v0 = vadd.f32 %v2702_v48, %v1429_v42 }
 0x1c8   : > { %v1589_v54 = vsel %vm1178_vm6, %v1586_v53, %v1588_v37 }
 0x1c9   : > { %v1621_v17 = vadd.f32 %v1581_v62, %v1525_v30 }
 0x1cb   : > { %1637 = vxpose.xlu0.b32.cont [8/16] (narrow) %v1621_v17, 32 }
 0x1cc   : > { %v1478_v2 = vpop.f32.mrf.mxu3 }
 0x1cd   : > { %v1479_v1 = vadd.f32 %v1478_v2, %v1430_v0  ;;  %v437_v43 = vpop.f32.mrf.mxu1 }
 0x1ce   : > { %v1431_v16 = vpop.f32.mrf.mxu2  ;;  %v1529_v36 = vpop.f32.mrf.mxu0  ;;  %v1590_v40 = vrot.slane %v437_v43, 2 }
 0x1cf   : > { %v1528_v11 = vadd.f32 %v1527_v61, %v1479_v1  ;;  %v1432_v59 = vadd.f32 %v2702_v48, %v1431_v16 }
 0x1d0   : > { %v1591_v12 = vsel %vm1178_vm6, %v1588_v37, %v1590_v40 }
 0x1d1   : > { %v1622_v13 = vadd.f32 %v1583_v34, %v1528_v11 }
 0x1d3   : > { %1638 = vxpose.xlu0.b32.cont [9/16] (narrow) %v1622_v13, 32 }
 0x1d4   : > { %v1480_v8 = vpop.f32.mrf.mxu3 }
 0x1d5   : > { %v1481_v55 = vadd.f32 %v1480_v8, %v1432_v59  ;;  %v440_v46 = vpop.f32.mrf.mxu1 }
 0x1d6   : > { %v1434_v51 = vpop.f32.mrf.mxu2  ;;  %v1532_v21 = vpop.f32.mrf.mxu0  ;;  %v1592_v58 = vrot.slane %v440_v46, 2 }
 0x1d7   : > { %v1530_v9 = vadd.f32 %v1529_v36, %v1481_v55  ;;  %v1435_v20 = vadd.f32 %v2702_v48, %v1434_v51 }
 0x1d8   : > { %v1593_v38 = vsel %vm1178_vm6, %v1590_v40, %v1592_v58 }
 0x1d9   : > { %v1623_v27 = vadd.f32 %v1585_v18, %v1530_v9 }
 0x1db   : > { %1639 = vxpose.xlu0.b32.cont [10/16] (narrow) %v1623_v27, 32 }
 0x1dc   : > { %v1483_v32 = vpop.f32.mrf.mxu3 }
 0x1dd   : > { %v1484_v44 = vadd.f32 %v1483_v32, %v1435_v20  ;;  %v442_v29 = vpop.f32.mrf.mxu1 }
 0x1de   : > { %v1436_v26 = vpop.f32.mrf.mxu2  ;;  %v1534_v49 = vpop.f32.mrf.mxu0  ;;  %v1594_v61 = vrot.slane %v442_v29, 2 }
 0x1df   : > { %v1533_v28 = vadd.f32 %v1532_v21, %v1484_v44  ;;  %v1437_v22 = vadd.f32 %v2702_v48, %v1436_v26 }
 0x1e0   : > { %v1595_v2 = vsel %vm1178_vm6, %v1592_v58, %v1594_v61 }
 0x1e1   : > { %v1624_v33 = vadd.f32 %v1587_v3, %v1533_v28 }
 0x1e3   : > { %1640 = vxpose.xlu0.b32.cont [11/16] (narrow) %v1624_v33, 32 }
 0x1e4   : > { %v1485_v41 = vpop.f32.mrf.mxu3 }
 0x1e5   : > { %v1486_v31 = vadd.f32 %v1485_v41, %v1437_v22  ;;  %v445_v15 = vpop.f32.mrf.mxu1 }
 0x1e6   : > { %v1439_v5 = vpop.f32.mrf.mxu2  ;;  %v1537_v35 = vpop.f32.mrf.mxu0  ;;  %v1596_v16 = vrot.slane %v445_v15, 2 }
 0x1e7   : > { %v1535_v4 = vadd.f32 %v1534_v49, %v1486_v31  ;;  %v1440_v39 = vadd.f32 %v2702_v48, %v1439_v5 }
 0x1e8   : > { %v1597_v59 = vsel %vm1178_vm6, %v1594_v61, %v1596_v16 }
 0x1e9   : > { %v1625_v6 = vadd.f32 %v1589_v54, %v1535_v4 }
 0x1eb   : > { %1641 = vxpose.xlu0.b32.cont [12/16] (narrow) %v1625_v6, 32 }
 0x1ec   : > { %v1488_v47 = vpop.f32.mrf.mxu3 }
 0x1ed   : > { %v1489_v14 = vadd.f32 %v1488_v47, %v1440_v39  ;;  %v447_v19 = vpop.f32.mrf.mxu1 }
 0x1ee   : > { %v1441_v24 = vpop.f32.mrf.mxu2  ;;  %v1539_v63 = vpop.f32.mrf.mxu0 }
 0x1ef   : > { %v1538_v52 = vadd.f32 %v1537_v35, %v1489_v14  ;;  %v1442_v25 = vadd.f32 %v2702_v48, %v1441_v24 }
 0x1f1   : > { %v1626_v57 = vadd.f32 %v1591_v12, %v1538_v52 }
 0x1f3   : > { %1642 = vxpose.xlu0.b32.cont [13/16] (narrow) %v1626_v57, 32 }
 0x1f4   : > { %v1490_v23 = vpop.f32.mrf.mxu3 }
 0x1f5   : > { %v1491_v10 = vadd.f32 %v1490_v23, %v1442_v25 }
 0x1f6   : > { %v1444_v60 = vpop.f32.mrf.mxu2  ;;  %v1542_v30 = vpop.f32.mrf.mxu0 }
 0x1f7   : > { %v1540_v45 = vadd.f32 %v1539_v63, %v1491_v10  ;;  %v1445_v42 = vadd.f32 %v2702_v48, %v1444_v60 }
 0x1f9   : > { %v1627_v56 = vadd.f32 %v1593_v38, %v1540_v45 }
 0x1fb   : > { %1643 = vxpose.xlu0.b32.cont [14/16] (narrow) %v1627_v56, 32 }
 0x1fc   : > { %v1493_v62 = vpop.f32.mrf.mxu3 }
 0x1fd   : > { %v1494_v17 = vadd.f32 %v1493_v62, %v1445_v42 }
 0x1fe   : > { %v1446_v50 = vpop.f32.mrf.mxu2  ;;  %v1544_v34 = vpop.f32.mrf.mxu0 }
 0x1ff   : > { %v1543_v0 = vadd.f32 %v1542_v30, %v1494_v17  ;;  %v1447_v43 = vadd.f32 %v2702_v48, %v1446_v50 }
 0x201   : > { %v1628_v1 = vadd.f32 %v1595_v2, %v1543_v0 }
 0x203   : > { %1644 = vxpose.xlu0.b32.cont [15/16] (narrow) %v1628_v1, 32 }
 0x204   : > { %v1495_v36 = vpop.f32.mrf.mxu3 }
 0x205   : > { %v1496_v11 = vadd.f32 %v1495_v36, %v1447_v43 }
 0x207   : > { %v1545_v13 = vadd.f32 %v1544_v34, %v1496_v11 }
 0x209   : > { %v1629_v7 = vadd.f32 %v1597_v59, %v1545_v13 }
 0x20b   : > { %1645 = vxpose.xlu0.b32.end [16/16] (narrow) %v1629_v7, 32 }
 0x237   : > { %v1646_v8 = vpop.trf.xlu0 }
 0x238   : > { %1662 = vst [vmem:[%s231_s17] sm:$0xff] %v1646_v8 }
 0x23f   : > { %v1647_v55 = vpop.trf.xlu0 }
 0x240   : > { %1663 = vst [vmem:[%s231_s17 + $0x8] sm:$0xff] %v1647_v55 }
 0x247   : > { %v1648_v48 = vpop.trf.xlu0 }
 0x248   : > { %1664 = vst [vmem:[%s231_s17 + $0x10] sm:$0xff] %v1648_v48 }
 0x24f   : > { %v1649_v46 = vpop.trf.xlu0 }
 0x250   : > { %1665 = vst [vmem:[%s231_s17 + $0x18] sm:$0xff] %v1649_v46 }
 0x251   : > { %2089 = shalt.err (!%p2086_p5)
}
 0x252   : > { %s2143_s14 = smov 128   ;;  %s2144_s17 = smov 8  }
 0x253   : > { %1962 = dma.vmem_to_hbm [thread:$0]  (%p2215_p4), %s1681_s7, 512, %s1683_s8, %s1667_s9, %s2143_s14, %s2143_s14, %s2144_s17  }
 0x254 PF: > { %p1968_p6 = scmp.ge.s32.totalorder %s2140_s23, 2  ;;  %s1697_s24 = sand.u32 1, %s2120_s18  }
 0x255   : > { %s1698_s25 = scalar_lea.sflag [#allocation3], %s1697_s24 }
 0x256   : > { %p1965_p7 = pnand %p1968_p6, %p2222_p8 }
 0x258   : > { %p1966_p9 = pneg %p1965_p7 }
 0x25a   : > { %2115 = dma.done.wait (%p1966_p9), %s1698_s25, 512  }
 0x25b   : > { %2117 = vsyncadd (%p1966_p9), %s1698_s25, 4294966784  ;;  %s18_s23 = sadd.s32 1, %s2140_s23   ;;  %s2785_s18 = smov %s2124_s19 }
 0x25c   : > { %p15_p10 = scmp.ge.s32.totalorder %s18_s23, 4   ;;  %s2786_s19 = smov %s2128_s20 }
 0x25d   : > { %s2787_s20 = smov %s2228_s6  ;;  %s2788_s21 = smov %s2136_s22 }
 0x25e   : > { %s2789_s22 = smov %s2791_s26  ;;  %17 = sbr.rel (!%p15_p10) target bundleno = 4 (0x4), region = 76 }
 0x263   :  { %1704 = vsyncpa [#allocation3], 1 }
 0x264   :  { %1706 = vsyncpa [#allocation3 + $0x1], 1 }

</bundles_post_ra>
